<compile_context>
chip_gen: v5e
topology: v5e:2x2
jax: 0.10.0
libtpu: 0.0.40
codegen_flags: <defaults>
</compile_context>

<pallas_src>
import functools
import math

import numpy as np
import jax
import jax.numpy as jnp
from jax import lax
from jax.experimental import pallas as pl
from jax.experimental.pallas import tpu as pltpu

EPS = 1e-5          # nn.InstanceNorm1d default eps (biased variance, no affine)
LANE = 128
SUBLANE = 8


def _round_up(x, m):
    return (x + m - 1) // m * m


def _cdiv(a, b):
    return -(-a // b)


def _layer_dims(input_size, output_size):
    # Linear chain of the module: [I, I, 3I, 2I, I, I, I, O] (7 Linears, Tanh between).
    return [input_size, input_size, 3 * input_size, 2 * input_size,
            input_size, input_size, input_size, output_size]


def init_params(key, input_size, output_size):
    """Deterministic synthetic params matching the module's Linear shapes (stored (in, out))."""
    dims = _layer_dims(input_size, output_size)
    linears = []
    for i in range(len(dims) - 1):
        key, kw, kb = jax.random.split(key, 3)
        bound = 1.0 / math.sqrt(dims[i])
        w = jax.random.uniform(kw, (dims[i], dims[i + 1]), jnp.float32, -bound, bound)
        b = jax.random.uniform(kb, (dims[i + 1],), jnp.float32, -bound, bound)
        linears.append((w, b))
    # InstanceNorm1d default affine=False -> no norm parameters.
    return {"linears": linears}


def pack_params(params):
    """One-time packing (hoisted out of the per-call path).

    Each Linear is padded per-layer to (round_up(in,128), round_up(out,128)); weights bf16
    (MXU-native), biases fp32. Padded rows/cols/lanes are zero, so padded lanes stay exactly
    zero through the net (zero bias + tanh(0)=0) and never leak into real outputs. The padded
    widths chain (out_pad[i] == in_pad[i+1]) so no slicing is needed between matmuls.
    """
    ws, bs = [], []
    for w, b in params["linears"]:
        ip, op = _round_up(w.shape[0], LANE), _round_up(w.shape[1], LANE)
        wp = jnp.zeros((ip, op), jnp.float32).at[:w.shape[0], :w.shape[1]].set(
            w.astype(jnp.float32))
        bp = jnp.zeros((1, op), jnp.float32).at[0, :b.shape[0]].set(b.astype(jnp.float32))
        ws.append(wp.astype(jnp.bfloat16))
        bs.append(bp)
    return {"w": tuple(ws), "b": tuple(bs)}


def _make_kernel(number_size, norm_time, n_layers):
    """Fused (masked InstanceNorm x2 + pass-through) -> per-layer-padded bf16 MLP."""

    def kernel(*refs):
        x_ref = refs[0]
        w_refs = refs[1:1 + n_layers]
        b_refs = refs[1 + n_layers:1 + 2 * n_layers]
        out_ref = refs[1 + 2 * n_layers]

        x = x_ref[...]                                       # (tb, in_pad) fp32, lane-dense
        in_pad = x.shape[-1]
        col = lax.broadcasted_iota(jnp.int32, (1, in_pad), 1)
        m_num = (col < number_size).astype(jnp.float32)
        m_time = ((col >= number_size) & (col < norm_time)).astype(jnp.float32)

        def seg_norm(mask, count):
            # Per-row InstanceNorm over masked lanes; result is 0 outside the mask.
            mean = jnp.sum(x * mask, axis=-1, keepdims=True) * (1.0 / count)
            centered = (x - mean) * mask
            var = jnp.sum(centered * centered, axis=-1, keepdims=True) * (1.0 / count)
            return centered * lax.rsqrt(var + EPS)           # VPU + EUP

        # Pass-through lanes (incl. zero padding lanes) + the two normalized segments.
        h = x * (1.0 - m_num - m_time)
        if number_size > 0:                                  # static guards: no div-by-zero
            h = h + seg_norm(m_num, number_size)
        if norm_time - number_size > 0:
            h = h + seg_norm(m_time, norm_time - number_size)

        # MLP: Linear -> Tanh (x6) -> Linear; bf16 MXU inputs, fp32 accumulation, per-layer pads.
        for i in range(n_layers):
            h = jnp.dot(h.astype(jnp.bfloat16), w_refs[i][...],
                        preferred_element_type=jnp.float32) + b_refs[i][...]
            if i < n_layers - 1:
                h = jnp.tanh(h)                              # EUP; tanh(0)=0 keeps pads at 0
        out_ref[...] = h                                     # (tb, out_pad) lane-dense store

    return kernel


@functools.partial(
    jax.jit,
    static_argnames=("number_size", "time_size", "output_size", "block_b",
                     "single_buffer_params"))
def _forward_impl(x, packed, *, number_size, time_size, output_size,
                  block_b=512, single_buffer_params=True):
    assert x.ndim == 3 and x.shape[1] == 1, "module's squeeze(1)/cat requires channel dim == 1"
    B, _, feat = x.shape
    norm_time = number_size + time_size
    ws, bs = packed["w"], packed["b"]
    n_layers = len(ws)
    in_pad = ws[0].shape[0]                    # round_up(input_size, 128)
    out_pad = ws[-1].shape[1]                  # round_up(output_size, 128)
    assert norm_time <= feat <= in_pad

    # Batch tile: multiple of 8, capped at block_b; prefer >=2 grid steps once the batch is
    # big enough so dimension_semantics=("parallel",) can shard across v7x's two TensorCores.
    tb = min(block_b, _round_up(B, SUBLANE))
    if B >= 2 * SUBLANE:
        tb = min(tb, _round_up(_cdiv(B, 2), SUBLANE))
    tb = max(SUBLANE, _round_up(tb, SUBLANE))
    b_pad = _round_up(B, tb)
    grid = (b_pad // tb,)

    # Input padded only to the first layer's lane width (not the widest layer).
    x2 = jnp.zeros((b_pad, in_pad), jnp.float32).at[:B, :feat].set(
        x.reshape(B, feat).astype(jnp.float32))

    # Params have constant index_maps -> fetched once, VMEM-resident across grid steps.
    # Request single buffering for them (halves their footprint; matters on v7x's 64 MiB VMEM).
    if single_buffer_params:
        pmode = pl.Buffered(buffer_count=1)
        w_specs = [pl.BlockSpec(w.shape, lambda i: (0, 0), pipeline_mode=pmode) for w in ws]
        b_specs = [pl.BlockSpec(b.shape, lambda i: (0, 0), pipeline_mode=pmode) for b in bs]
    else:
        w_specs = [pl.BlockSpec(w.shape, lambda i: (0, 0)) for w in ws]
        b_specs = [pl.BlockSpec(b.shape, lambda i: (0, 0)) for b in bs]

    param_bytes = sum(w.size * 2 for w in ws) + sum(b.size * 4 for b in bs)
    widest = max(w.shape[1] for w in ws)
    vmem_limit = int(min(max(
        2 * param_bytes                              # resident params (budget 2x to be safe)
        + 2 * tb * (in_pad + out_pad) * 4            # double-buffered x / out tiles
        + 6 * tb * widest * 4                        # headroom for fp32 h intermediates
        + (4 << 20),
        16 << 20), 112 << 20))

    # Advisory cost computed from the PADDED shapes actually executed.
    flops = 2 * b_pad * sum(w.shape[0] * w.shape[1] for w in ws)
    transcendentals = b_pad * (sum(w.shape[1] for w in ws[:-1]) + 2)
    bytes_accessed = int(x2.size * 4 + param_bytes + b_pad * out_pad * 4)

    kernel = _make_kernel(number_size, norm_time, n_layers)
    out = pl.pallas_call(
        kernel,
        out_shape=jax.ShapeDtypeStruct((b_pad, out_pad), jnp.float32),
        grid_spec=pltpu.PrefetchScalarGridSpec(
            num_scalar_prefetch=0,
            grid=grid,
            in_specs=[pl.BlockSpec((tb, in_pad), lambda i: (i, 0))] + w_specs + b_specs,
            out_specs=pl.BlockSpec((tb, out_pad), lambda i: (i, 0)),
        ),
        compiler_params=pltpu.CompilerParams(
            dimension_semantics=("parallel",),
            vmem_limit_bytes=vmem_limit),
        cost_estimate=pl.CostEstimate(
            flops=flops, transcendentals=transcendentals, bytes_accessed=bytes_accessed),
    )(x2, *ws, *bs)

    return out[:B, :output_size]                   # slice real rows / columns


def network_normalization_forward(x, packed_params, number_size, time_size, output_size,
                                  block_b=512):
    """Fused forward. Tries single-buffered resident params first; falls back to default
    double buffering if this jax/Pallas build rejects the pipeline_mode hint."""
    kwargs = dict(number_size=number_size, time_size=time_size, output_size=output_size,
                  block_b=block_b)
    try:
        out = _forward_impl(x, packed_params, single_buffer_params=True, **kwargs)
        return jax.block_until_ready(out)
    except Exception:
        out = _forward_impl(x, packed_params, single_buffer_params=False, **kwargs)
        return jax.block_until_ready(out)


def reference_forward(x, params, number_size, time_size):
    """Plain-JAX fp32 reference mirroring the PyTorch forward."""
    B, _, feat = x.shape
    x2 = x.reshape(B, feat).astype(jnp.float32)
    nt = number_size + time_size

    def inorm(seg):
        mean = jnp.mean(seg, axis=-1, keepdims=True)
        var = jnp.mean((seg - mean) ** 2, axis=-1, keepdims=True)
        return (seg - mean) / jnp.sqrt(var + EPS)

    h = jnp.concatenate(
        [inorm(x2[:, :number_size]), inorm(x2[:, number_size:nt]), x2[:, nt:]], axis=-1)
    n = len(params["linears"])
    for i, (w, b) in enumerate(params["linears"]):
        h = jnp.dot(h, w, precision=lax.Precision.HIGHEST) + b
        if i < n - 1:
            h = jnp.tanh(h)
    return h


if __name__ == "__main__":
    # Small shapes consistent with the module: x is (B, 1, input_size) with
    # input_size = number_size + time_size + rest.
    input_size = 32
    output_size = 4
    number_size = 8
    time_size = 12
    batch = 2

    key = jax.random.PRNGKey(0)
    k_params, k_x = jax.random.split(key)
    params = init_params(k_params, input_size, output_size)
    packed = pack_params(params)          # one-time packing; reused across forward calls
    x = jax.random.normal(k_x, (batch, 1, input_size), dtype=jnp.float32)

    out = network_normalization_forward(x, packed, number_size, time_size, output_size)
    out = jax.block_until_ready(out)

    ref = reference_forward(x, params, number_size, time_size)
    assert out.shape == (batch, output_size)
    # bf16 weights on the MXU vs fp32 reference -> loose-ish tolerance.
    np.testing.assert_allclose(np.asarray(out), np.asarray(ref), rtol=2e-2, atol=2e-2)

    # TODO(synk): the module's per-machine module_dict / Adam optimizer_dict and smooth_l1_loss
    # are host-side training bookkeeping, not part of the forward compute, and are not kernelized.
    print("KERNEL_OK")
</pallas_src>

<mosaic_0001>
module attributes {stable_mosaic.version = 11 : i64} {
  func.func @kernel(%arg0: i32, %arg1: memref<8x128xf32, #tpu.memory_space<vmem>>, %arg2: memref<128x128xbf16, #tpu.memory_space<vmem>>, %arg3: memref<128x128xbf16, #tpu.memory_space<vmem>>, %arg4: memref<128x128xbf16, #tpu.memory_space<vmem>>, %arg5: memref<128x128xbf16, #tpu.memory_space<vmem>>, %arg6: memref<128x128xbf16, #tpu.memory_space<vmem>>, %arg7: memref<128x128xbf16, #tpu.memory_space<vmem>>, %arg8: memref<128x128xbf16, #tpu.memory_space<vmem>>, %arg9: memref<1x128xf32, #tpu.memory_space<vmem>>, %arg10: memref<1x128xf32, #tpu.memory_space<vmem>>, %arg11: memref<1x128xf32, #tpu.memory_space<vmem>>, %arg12: memref<1x128xf32, #tpu.memory_space<vmem>>, %arg13: memref<1x128xf32, #tpu.memory_space<vmem>>, %arg14: memref<1x128xf32, #tpu.memory_space<vmem>>, %arg15: memref<1x128xf32, #tpu.memory_space<vmem>>, %arg16: memref<8x128xf32, #tpu.memory_space<vmem>>) attributes {dimension_semantics = [#tpu.dimension_semantics<parallel>], iteration_bounds = array<i64: 1>, scalar_prefetch = 0 : i64, scratch_operands = 0 : i64, tpu.core_type = #tpu.core_type<tc>, window_params = [{transform_indices = @transform_0, window_bounds = array<i64: 8, 128>}, {pipeline_mode = #tpu.pipeline_mode<synchronous>, transform_indices = @transform_1, window_bounds = array<i64: 128, 128>}, {pipeline_mode = #tpu.pipeline_mode<synchronous>, transform_indices = @transform_2, window_bounds = array<i64: 128, 128>}, {pipeline_mode = #tpu.pipeline_mode<synchronous>, transform_indices = @transform_3, window_bounds = array<i64: 128, 128>}, {pipeline_mode = #tpu.pipeline_mode<synchronous>, transform_indices = @transform_4, window_bounds = array<i64: 128, 128>}, {pipeline_mode = #tpu.pipeline_mode<synchronous>, transform_indices = @transform_5, window_bounds = array<i64: 128, 128>}, {pipeline_mode = #tpu.pipeline_mode<synchronous>, transform_indices = @transform_6, window_bounds = array<i64: 128, 128>}, {pipeline_mode = #tpu.pipeline_mode<synchronous>, transform_indices = @transform_7, window_bounds = array<i64: 128, 128>}, {pipeline_mode = #tpu.pipeline_mode<synchronous>, transform_indices = @transform_8, window_bounds = array<i64: 1, 128>}, {pipeline_mode = #tpu.pipeline_mode<synchronous>, transform_indices = @transform_9, window_bounds = array<i64: 1, 128>}, {pipeline_mode = #tpu.pipeline_mode<synchronous>, transform_indices = @transform_10, window_bounds = array<i64: 1, 128>}, {pipeline_mode = #tpu.pipeline_mode<synchronous>, transform_indices = @transform_11, window_bounds = array<i64: 1, 128>}, {pipeline_mode = #tpu.pipeline_mode<synchronous>, transform_indices = @transform_12, window_bounds = array<i64: 1, 128>}, {pipeline_mode = #tpu.pipeline_mode<synchronous>, transform_indices = @transform_13, window_bounds = array<i64: 1, 128>}, {pipeline_mode = #tpu.pipeline_mode<synchronous>, transform_indices = @transform_14, window_bounds = array<i64: 1, 128>}, {transform_indices = @transform_15, window_bounds = array<i64: 8, 128>}]} {
    %c0 = arith.constant 0 : index
    %c0_0 = arith.constant 0 : index
    %0 = vector.load %arg1[%c0, %c0_0] : memref<8x128xf32, #tpu.memory_space<vmem>>, vector<8x128xf32>
    %1 = tpu.iota {dimensions = array<i32: 1>} : vector<1x128xi32>
    %c8_i32 = arith.constant 8 : i32
    %2 = vector.broadcast %c8_i32 : i32 to vector<1x128xi32>
    %3 = arith.cmpi slt, %1, %2 : vector<1x128xi32>
    %4 = arith.extui %3 : vector<1x128xi1> to vector<1x128xi32>
    %5 = arith.sitofp %4 : vector<1x128xi32> to vector<1x128xf32>
    %c8_i32_1 = arith.constant 8 : i32
    %6 = vector.broadcast %c8_i32_1 : i32 to vector<1x128xi32>
    %7 = arith.cmpi sge, %1, %6 : vector<1x128xi32>
    %c20_i32 = arith.constant 20 : i32
    %8 = vector.broadcast %c20_i32 : i32 to vector<1x128xi32>
    %9 = arith.cmpi slt, %1, %8 : vector<1x128xi32>
    %10 = arith.andi %7, %9 : vector<1x128xi1>
    %11 = arith.extui %10 : vector<1x128xi1> to vector<1x128xi32>
    %12 = arith.sitofp %11 : vector<1x128xi32> to vector<1x128xf32>
    %cst = arith.constant 1.000000e+00 : f32
    %13 = vector.broadcast %cst : f32 to vector<1x128xf32>
    %14 = arith.subf %13, %5 : vector<1x128xf32>
    %15 = arith.subf %14, %12 : vector<1x128xf32>
    %16 = vector.broadcast %15 : vector<1x128xf32> to vector<8x128xf32>
    %17 = arith.mulf %0, %16 : vector<8x128xf32>
    %18 = vector.broadcast %5 : vector<1x128xf32> to vector<8x128xf32>
    %19 = arith.mulf %0, %18 : vector<8x128xf32>
    %cst_2 = arith.constant dense<0.000000e+00> : vector<8xf32>
    %20 = vector.multi_reduction <add>, %19, %cst_2 [1] : vector<8x128xf32> to vector<8xf32>
    %21 = vector.shape_cast %20 : vector<8xf32> to vector<8x1xf32>
    %cst_3 = arith.constant 1.250000e-01 : f32
    %22 = vector.broadcast %cst_3 : f32 to vector<8x1xf32>
    %23 = arith.mulf %21, %22 : vector<8x1xf32>
    %24 = vector.broadcast %23 : vector<8x1xf32> to vector<8x128xf32>
    %25 = arith.subf %0, %24 : vector<8x128xf32>
    %26 = vector.broadcast %5 : vector<1x128xf32> to vector<8x128xf32>
    %27 = arith.mulf %25, %26 : vector<8x128xf32>
    %28 = arith.mulf %27, %27 : vector<8x128xf32>
    %cst_4 = arith.constant dense<0.000000e+00> : vector<8xf32>
    %29 = vector.multi_reduction <add>, %28, %cst_4 [1] : vector<8x128xf32> to vector<8xf32>
    %30 = vector.shape_cast %29 : vector<8xf32> to vector<8x1xf32>
    %cst_5 = arith.constant 1.250000e-01 : f32
    %31 = vector.broadcast %cst_5 : f32 to vector<8x1xf32>
    %32 = arith.mulf %30, %31 : vector<8x1xf32>
    %cst_6 = arith.constant 9.99999974E-6 : f32
    %33 = vector.broadcast %cst_6 : f32 to vector<8x1xf32>
    %34 = arith.addf %32, %33 : vector<8x1xf32>
    %35 = math.rsqrt %34 : vector<8x1xf32>
    %36 = vector.broadcast %35 : vector<8x1xf32> to vector<8x128xf32>
    %37 = arith.mulf %27, %36 : vector<8x128xf32>
    %38 = arith.addf %17, %37 : vector<8x128xf32>
    %39 = vector.broadcast %12 : vector<1x128xf32> to vector<8x128xf32>
    %40 = arith.mulf %0, %39 : vector<8x128xf32>
    %cst_7 = arith.constant dense<0.000000e+00> : vector<8xf32>
    %41 = vector.multi_reduction <add>, %40, %cst_7 [1] : vector<8x128xf32> to vector<8xf32>
    %42 = vector.shape_cast %41 : vector<8xf32> to vector<8x1xf32>
    %cst_8 = arith.constant 0.0833333358 : f32
    %43 = vector.broadcast %cst_8 : f32 to vector<8x1xf32>
    %44 = arith.mulf %42, %43 : vector<8x1xf32>
    %45 = vector.broadcast %44 : vector<8x1xf32> to vector<8x128xf32>
    %46 = arith.subf %0, %45 : vector<8x128xf32>
    %47 = vector.broadcast %12 : vector<1x128xf32> to vector<8x128xf32>
    %48 = arith.mulf %46, %47 : vector<8x128xf32>
    %49 = arith.mulf %48, %48 : vector<8x128xf32>
    %cst_9 = arith.constant dense<0.000000e+00> : vector<8xf32>
    %50 = vector.multi_reduction <add>, %49, %cst_9 [1] : vector<8x128xf32> to vector<8xf32>
    %51 = vector.shape_cast %50 : vector<8xf32> to vector<8x1xf32>
    %cst_10 = arith.constant 0.0833333358 : f32
    %52 = vector.broadcast %cst_10 : f32 to vector<8x1xf32>
    %53 = arith.mulf %51, %52 : vector<8x1xf32>
    %cst_11 = arith.constant 9.99999974E-6 : f32
    %54 = vector.broadcast %cst_11 : f32 to vector<8x1xf32>
    %55 = arith.addf %53, %54 : vector<8x1xf32>
    %56 = math.rsqrt %55 : vector<8x1xf32>
    %57 = vector.broadcast %56 : vector<8x1xf32> to vector<8x128xf32>
    %58 = arith.mulf %48, %57 : vector<8x128xf32>
    %59 = arith.addf %38, %58 : vector<8x128xf32>
    %60 = arith.truncf %59 : vector<8x128xf32> to vector<8x128xbf16>
    %c0_12 = arith.constant 0 : index
    %c0_13 = arith.constant 0 : index
    %61 = vector.load %arg2[%c0_12, %c0_13] : memref<128x128xbf16, #tpu.memory_space<vmem>>, vector<128x128xbf16>
    %cst_14 = arith.constant dense<0.000000e+00> : vector<8x128xf32>
    %62 = tpu.matmul %60, %61, %cst_14 {dimension_numbers = #tpu.dot_dimension_numbers<[1], [0], [0], [1], [0, 0, 1, 1], [], []>} : vector<8x128xbf16>, vector<128x128xbf16>, vector<8x128xf32> -> vector<8x128xf32>
    %c0_15 = arith.constant 0 : index
    %c0_16 = arith.constant 0 : index
    %63 = vector.load %arg9[%c0_15, %c0_16] : memref<1x128xf32, #tpu.memory_space<vmem>>, vector<1x128xf32>
    %64 = vector.broadcast %63 : vector<1x128xf32> to vector<8x128xf32>
    %65 = arith.addf %62, %64 : vector<8x128xf32>
    %66 = math.tanh %65 : vector<8x128xf32>
    %67 = arith.truncf %66 : vector<8x128xf32> to vector<8x128xbf16>
    %c0_17 = arith.constant 0 : index
    %c0_18 = arith.constant 0 : index
    %68 = vector.load %arg3[%c0_17, %c0_18] : memref<128x128xbf16, #tpu.memory_space<vmem>>, vector<128x128xbf16>
    %cst_19 = arith.constant dense<0.000000e+00> : vector<8x128xf32>
    %69 = tpu.matmul %67, %68, %cst_19 {dimension_numbers = #tpu.dot_dimension_numbers<[1], [0], [0], [1], [0, 0, 1, 1], [], []>} : vector<8x128xbf16>, vector<128x128xbf16>, vector<8x128xf32> -> vector<8x128xf32>
    %c0_20 = arith.constant 0 : index
    %c0_21 = arith.constant 0 : index
    %70 = vector.load %arg10[%c0_20, %c0_21] : memref<1x128xf32, #tpu.memory_space<vmem>>, vector<1x128xf32>
    %71 = vector.broadcast %70 : vector<1x128xf32> to vector<8x128xf32>
    %72 = arith.addf %69, %71 : vector<8x128xf32>
    %73 = math.tanh %72 : vector<8x128xf32>
    %74 = arith.truncf %73 : vector<8x128xf32> to vector<8x128xbf16>
    %c0_22 = arith.constant 0 : index
    %c0_23 = arith.constant 0 : index
    %75 = vector.load %arg4[%c0_22, %c0_23] : memref<128x128xbf16, #tpu.memory_space<vmem>>, vector<128x128xbf16>
    %cst_24 = arith.constant dense<0.000000e+00> : vector<8x128xf32>
    %76 = tpu.matmul %74, %75, %cst_24 {dimension_numbers = #tpu.dot_dimension_numbers<[1], [0], [0], [1], [0, 0, 1, 1], [], []>} : vector<8x128xbf16>, vector<128x128xbf16>, vector<8x128xf32> -> vector<8x128xf32>
    %c0_25 = arith.constant 0 : index
    %c0_26 = arith.constant 0 : index
    %77 = vector.load %arg11[%c0_25, %c0_26] : memref<1x128xf32, #tpu.memory_space<vmem>>, vector<1x128xf32>
    %78 = vector.broadcast %77 : vector<1x128xf32> to vector<8x128xf32>
    %79 = arith.addf %76, %78 : vector<8x128xf32>
    %80 = math.tanh %79 : vector<8x128xf32>
    %81 = arith.truncf %80 : vector<8x128xf32> to vector<8x128xbf16>
    %c0_27 = arith.constant 0 : index
    %c0_28 = arith.constant 0 : index
    %82 = vector.load %arg5[%c0_27, %c0_28] : memref<128x128xbf16, #tpu.memory_space<vmem>>, vector<128x128xbf16>
    %cst_29 = arith.constant dense<0.000000e+00> : vector<8x128xf32>
    %83 = tpu.matmul %81, %82, %cst_29 {dimension_numbers = #tpu.dot_dimension_numbers<[1], [0], [0], [1], [0, 0, 1, 1], [], []>} : vector<8x128xbf16>, vector<128x128xbf16>, vector<8x128xf32> -> vector<8x128xf32>
    %c0_30 = arith.constant 0 : index
    %c0_31 = arith.constant 0 : index
    %84 = vector.load %arg12[%c0_30, %c0_31] : memref<1x128xf32, #tpu.memory_space<vmem>>, vector<1x128xf32>
    %85 = vector.broadcast %84 : vector<1x128xf32> to vector<8x128xf32>
    %86 = arith.addf %83, %85 : vector<8x128xf32>
    %87 = math.tanh %86 : vector<8x128xf32>
    %88 = arith.truncf %87 : vector<8x128xf32> to vector<8x128xbf16>
    %c0_32 = arith.constant 0 : index
    %c0_33 = arith.constant 0 : index
    %89 = vector.load %arg6[%c0_32, %c0_33] : memref<128x128xbf16, #tpu.memory_space<vmem>>, vector<128x128xbf16>
    %cst_34 = arith.constant dense<0.000000e+00> : vector<8x128xf32>
    %90 = tpu.matmul %88, %89, %cst_34 {dimension_numbers = #tpu.dot_dimension_numbers<[1], [0], [0], [1], [0, 0, 1, 1], [], []>} : vector<8x128xbf16>, vector<128x128xbf16>, vector<8x128xf32> -> vector<8x128xf32>
    %c0_35 = arith.constant 0 : index
    %c0_36 = arith.constant 0 : index
    %91 = vector.load %arg13[%c0_35, %c0_36] : memref<1x128xf32, #tpu.memory_space<vmem>>, vector<1x128xf32>
    %92 = vector.broadcast %91 : vector<1x128xf32> to vector<8x128xf32>
    %93 = arith.addf %90, %92 : vector<8x128xf32>
    %94 = math.tanh %93 : vector<8x128xf32>
    %95 = arith.truncf %94 : vector<8x128xf32> to vector<8x128xbf16>
    %c0_37 = arith.constant 0 : index
    %c0_38 = arith.constant 0 : index
    %96 = vector.load %arg7[%c0_37, %c0_38] : memref<128x128xbf16, #tpu.memory_space<vmem>>, vector<128x128xbf16>
    %cst_39 = arith.constant dense<0.000000e+00> : vector<8x128xf32>
    %97 = tpu.matmul %95, %96, %cst_39 {dimension_numbers = #tpu.dot_dimension_numbers<[1], [0], [0], [1], [0, 0, 1, 1], [], []>} : vector<8x128xbf16>, vector<128x128xbf16>, vector<8x128xf32> -> vector<8x128xf32>
    %c0_40 = arith.constant 0 : index
    %c0_41 = arith.constant 0 : index
    %98 = vector.load %arg14[%c0_40, %c0_41] : memref<1x128xf32, #tpu.memory_space<vmem>>, vector<1x128xf32>
    %99 = vector.broadcast %98 : vector<1x128xf32> to vector<8x128xf32>
    %100 = arith.addf %97, %99 : vector<8x128xf32>
    %101 = math.tanh %100 : vector<8x128xf32>
    %102 = arith.truncf %101 : vector<8x128xf32> to vector<8x128xbf16>
    %c0_42 = arith.constant 0 : index
    %c0_43 = arith.constant 0 : index
    %103 = vector.load %arg8[%c0_42, %c0_43] : memref<128x128xbf16, #tpu.memory_space<vmem>>, vector<128x128xbf16>
    %cst_44 = arith.constant dense<0.000000e+00> : vector<8x128xf32>
    %104 = tpu.matmul %102, %103, %cst_44 {dimension_numbers = #tpu.dot_dimension_numbers<[1], [0], [0], [1], [0, 0, 1, 1], [], []>} : vector<8x128xbf16>, vector<128x128xbf16>, vector<8x128xf32> -> vector<8x128xf32>
    %c0_45 = arith.constant 0 : index
    %c0_46 = arith.constant 0 : index
    %105 = vector.load %arg15[%c0_45, %c0_46] : memref<1x128xf32, #tpu.memory_space<vmem>>, vector<1x128xf32>
    %106 = vector.broadcast %105 : vector<1x128xf32> to vector<8x128xf32>
    %107 = arith.addf %104, %106 : vector<8x128xf32>
    %c0_47 = arith.constant 0 : index
    %c0_48 = arith.constant 0 : index
    %108 = vector.load %arg16[%c0_47, %c0_48] : memref<8x128xf32, #tpu.memory_space<vmem>>, vector<8x128xf32>
    tpu.vector_store %arg16[%c0_47, %c0_48], %107 {strides = array<i32>} : memref<8x128xf32, #tpu.memory_space<vmem>>, vector<8x128xf32>,
    return
  }
  func.func @transform_0(%arg0: i32) -> (i32, i32) {
    %c0_i32 = arith.constant 0 : i32
    %c0_i32_0 = arith.constant 0 : i32
    return %arg0, %c0_i32 : i32, i32
  }
  func.func @transform_1(%arg0: i32) -> (i32, i32) {
    %c0_i32 = arith.constant 0 : i32
    %c0_i32_0 = arith.constant 0 : i32
    %c0_i32_1 = arith.constant 0 : i32
    return %c0_i32, %c0_i32_0 : i32, i32
  }
  func.func @transform_2(%arg0: i32) -> (i32, i32) {
    %c0_i32 = arith.constant 0 : i32
    %c0_i32_0 = arith.constant 0 : i32
    %c0_i32_1 = arith.constant 0 : i32
    return %c0_i32, %c0_i32_0 : i32, i32
  }
  func.func @transform_3(%arg0: i32) -> (i32, i32) {
    %c0_i32 = arith.constant 0 : i32
    %c0_i32_0 = arith.constant 0 : i32
    %c0_i32_1 = arith.constant 0 : i32
    return %c0_i32, %c0_i32_0 : i32, i32
  }
  func.func @transform_4(%arg0: i32) -> (i32, i32) {
    %c0_i32 = arith.constant 0 : i32
    %c0_i32_0 = arith.constant 0 : i32
    %c0_i32_1 = arith.constant 0 : i32
    return %c0_i32, %c0_i32_0 : i32, i32
  }
  func.func @transform_5(%arg0: i32) -> (i32, i32) {
    %c0_i32 = arith.constant 0 : i32
    %c0_i32_0 = arith.constant 0 : i32
    %c0_i32_1 = arith.constant 0 : i32
    return %c0_i32, %c0_i32_0 : i32, i32
  }
  func.func @transform_6(%arg0: i32) -> (i32, i32) {
    %c0_i32 = arith.constant 0 : i32
    %c0_i32_0 = arith.constant 0 : i32
    %c0_i32_1 = arith.constant 0 : i32
    return %c0_i32, %c0_i32_0 : i32, i32
  }
  func.func @transform_7(%arg0: i32) -> (i32, i32) {
    %c0_i32 = arith.constant 0 : i32
    %c0_i32_0 = arith.constant 0 : i32
    %c0_i32_1 = arith.constant 0 : i32
    return %c0_i32, %c0_i32_0 : i32, i32
  }
  func.func @transform_8(%arg0: i32) -> (i32, i32) {
    %c0_i32 = arith.constant 0 : i32
    %c0_i32_0 = arith.constant 0 : i32
    %c0_i32_1 = arith.constant 0 : i32
    return %c0_i32, %c0_i32_0 : i32, i32
  }
  func.func @transform_9(%arg0: i32) -> (i32, i32) {
    %c0_i32 = arith.constant 0 : i32
    %c0_i32_0 = arith.constant 0 : i32
    %c0_i32_1 = arith.constant 0 : i32
    return %c0_i32, %c0_i32_0 : i32, i32
  }
  func.func @transform_10(%arg0: i32) -> (i32, i32) {
    %c0_i32 = arith.constant 0 : i32
    %c0_i32_0 = arith.constant 0 : i32
    %c0_i32_1 = arith.constant 0 : i32
    return %c0_i32, %c0_i32_0 : i32, i32
  }
  func.func @transform_11(%arg0: i32) -> (i32, i32) {
    %c0_i32 = arith.constant 0 : i32
    %c0_i32_0 = arith.constant 0 : i32
    %c0_i32_1 = arith.constant 0 : i32
    return %c0_i32, %c0_i32_0 : i32, i32
  }
  func.func @transform_12(%arg0: i32) -> (i32, i32) {
    %c0_i32 = arith.constant 0 : i32
    %c0_i32_0 = arith.constant 0 : i32
    %c0_i32_1 = arith.constant 0 : i32
    return %c0_i32, %c0_i32_0 : i32, i32
  }
  func.func @transform_13(%arg0: i32) -> (i32, i32) {
    %c0_i32 = arith.constant 0 : i32
    %c0_i32_0 = arith.constant 0 : i32
    %c0_i32_1 = arith.constant 0 : i32
    return %c0_i32, %c0_i32_0 : i32, i32
  }
  func.func @transform_14(%arg0: i32) -> (i32, i32) {
    %c0_i32 = arith.constant 0 : i32
    %c0_i32_0 = arith.constant 0 : i32
    %c0_i32_1 = arith.constant 0 : i32
    return %c0_i32, %c0_i32_0 : i32, i32
  }
  func.func @transform_15(%arg0: i32) -> (i32, i32) {
    %c0_i32 = arith.constant 0 : i32
    %c0_i32_0 = arith.constant 0 : i32
    return %arg0, %c0_i32 : i32, i32
  }
}

module attributes {stable_mosaic.version = 11 : i64} {
  func.func @kernel(%arg0: i32, %arg1: memref<8x128xf32, #tpu.memory_space<vmem>>, %arg2: memref<128x128xbf16, #tpu.memory_space<vmem>>, %arg3: memref<128x128xbf16, #tpu.memory_space<vmem>>, %arg4: memref<128x128xbf16, #tpu.memory_space<vmem>>, %arg5: memref<128x128xbf16, #tpu.memory_space<vmem>>, %arg6: memref<128x128xbf16, #tpu.memory_space<vmem>>, %arg7: memref<128x128xbf16, #tpu.memory_space<vmem>>, %arg8: memref<128x128xbf16, #tpu.memory_space<vmem>>, %arg9: memref<1x128xf32, #tpu.memory_space<vmem>>, %arg10: memref<1x128xf32, #tpu.memory_space<vmem>>, %arg11: memref<1x128xf32, #tpu.memory_space<vmem>>, %arg12: memref<1x128xf32, #tpu.memory_space<vmem>>, %arg13: memref<1x128xf32, #tpu.memory_space<vmem>>, %arg14: memref<1x128xf32, #tpu.memory_space<vmem>>, %arg15: memref<1x128xf32, #tpu.memory_space<vmem>>, %arg16: memref<8x128xf32, #tpu.memory_space<vmem>>) attributes {dimension_semantics = [#tpu.dimension_semantics<parallel>], iteration_bounds = array<i64: 1>, scalar_prefetch = 0 : i64, scratch_operands = 0 : i64, tpu.core_type = #tpu.core_type<tc>, window_params = [{transform_indices = @transform_0, window_bounds = array<i64: 8, 128>}, {pipeline_mode = #tpu.pipeline_mode<synchronous>, transform_indices = @transform_1, window_bounds = array<i64: 128, 128>}, {pipeline_mode = #tpu.pipeline_mode<synchronous>, transform_indices = @transform_2, window_bounds = array<i64: 128, 128>}, {pipeline_mode = #tpu.pipeline_mode<synchronous>, transform_indices = @transform_3, window_bounds = array<i64: 128, 128>}, {pipeline_mode = #tpu.pipeline_mode<synchronous>, transform_indices = @transform_4, window_bounds = array<i64: 128, 128>}, {pipeline_mode = #tpu.pipeline_mode<synchronous>, transform_indices = @transform_5, window_bounds = array<i64: 128, 128>}, {pipeline_mode = #tpu.pipeline_mode<synchronous>, transform_indices = @transform_6, window_bounds = array<i64: 128, 128>}, {pipeline_mode = #tpu.pipeline_mode<synchronous>, transform_indices = @transform_7, window_bounds = array<i64: 128, 128>}, {pipeline_mode = #tpu.pipeline_mode<synchronous>, transform_indices = @transform_8, window_bounds = array<i64: 1, 128>}, {pipeline_mode = #tpu.pipeline_mode<synchronous>, transform_indices = @transform_9, window_bounds = array<i64: 1, 128>}, {pipeline_mode = #tpu.pipeline_mode<synchronous>, transform_indices = @transform_10, window_bounds = array<i64: 1, 128>}, {pipeline_mode = #tpu.pipeline_mode<synchronous>, transform_indices = @transform_11, window_bounds = array<i64: 1, 128>}, {pipeline_mode = #tpu.pipeline_mode<synchronous>, transform_indices = @transform_12, window_bounds = array<i64: 1, 128>}, {pipeline_mode = #tpu.pipeline_mode<synchronous>, transform_indices = @transform_13, window_bounds = array<i64: 1, 128>}, {pipeline_mode = #tpu.pipeline_mode<synchronous>, transform_indices = @transform_14, window_bounds = array<i64: 1, 128>}, {transform_indices = @transform_15, window_bounds = array<i64: 8, 128>}]} {
    %c0 = arith.constant 0 : index
    %c0_0 = arith.constant 0 : index
    %0 = vector.load %arg1[%c0, %c0_0] : memref<8x128xf32, #tpu.memory_space<vmem>>, vector<8x128xf32>
    %1 = tpu.iota {dimensions = array<i32: 1>} : vector<1x128xi32>
    %c8_i32 = arith.constant 8 : i32
    %2 = vector.broadcast %c8_i32 : i32 to vector<1x128xi32>
    %3 = arith.cmpi slt, %1, %2 : vector<1x128xi32>
    %4 = arith.extui %3 : vector<1x128xi1> to vector<1x128xi32>
    %5 = arith.sitofp %4 : vector<1x128xi32> to vector<1x128xf32>
    %c8_i32_1 = arith.constant 8 : i32
    %6 = vector.broadcast %c8_i32_1 : i32 to vector<1x128xi32>
    %7 = arith.cmpi sge, %1, %6 : vector<1x128xi32>
    %c20_i32 = arith.constant 20 : i32
    %8 = vector.broadcast %c20_i32 : i32 to vector<1x128xi32>
    %9 = arith.cmpi slt, %1, %8 : vector<1x128xi32>
    %10 = arith.andi %7, %9 : vector<1x128xi1>
    %11 = arith.extui %10 : vector<1x128xi1> to vector<1x128xi32>
    %12 = arith.sitofp %11 : vector<1x128xi32> to vector<1x128xf32>
    %cst = arith.constant 1.000000e+00 : f32
    %13 = vector.broadcast %cst : f32 to vector<1x128xf32>
    %14 = arith.subf %13, %5 : vector<1x128xf32>
    %15 = arith.subf %14, %12 : vector<1x128xf32>
    %16 = vector.broadcast %15 : vector<1x128xf32> to vector<8x128xf32>
    %17 = arith.mulf %0, %16 : vector<8x128xf32>
    %18 = vector.broadcast %5 : vector<1x128xf32> to vector<8x128xf32>
    %19 = arith.mulf %0, %18 : vector<8x128xf32>
    %cst_2 = arith.constant dense<0.000000e+00> : vector<8xf32>
    %20 = vector.multi_reduction <add>, %19, %cst_2 [1] : vector<8x128xf32> to vector<8xf32>
    %21 = vector.shape_cast %20 : vector<8xf32> to vector<8x1xf32>
    %cst_3 = arith.constant 1.250000e-01 : f32
    %22 = vector.broadcast %cst_3 : f32 to vector<8x1xf32>
    %23 = arith.mulf %21, %22 : vector<8x1xf32>
    %24 = vector.broadcast %23 : vector<8x1xf32> to vector<8x128xf32>
    %25 = arith.subf %0, %24 : vector<8x128xf32>
    %26 = vector.broadcast %5 : vector<1x128xf32> to vector<8x128xf32>
    %27 = arith.mulf %25, %26 : vector<8x128xf32>
    %28 = arith.mulf %27, %27 : vector<8x128xf32>
    %cst_4 = arith.constant dense<0.000000e+00> : vector<8xf32>
    %29 = vector.multi_reduction <add>, %28, %cst_4 [1] : vector<8x128xf32> to vector<8xf32>
    %30 = vector.shape_cast %29 : vector<8xf32> to vector<8x1xf32>
    %cst_5 = arith.constant 1.250000e-01 : f32
    %31 = vector.broadcast %cst_5 : f32 to vector<8x1xf32>
    %32 = arith.mulf %30, %31 : vector<8x1xf32>
    %cst_6 = arith.constant 9.99999974E-6 : f32
    %33 = vector.broadcast %cst_6 : f32 to vector<8x1xf32>
    %34 = arith.addf %32, %33 : vector<8x1xf32>
    %35 = math.rsqrt %34 : vector<8x1xf32>
    %36 = vector.broadcast %35 : vector<8x1xf32> to vector<8x128xf32>
    %37 = arith.mulf %27, %36 : vector<8x128xf32>
    %38 = arith.addf %17, %37 : vector<8x128xf32>
    %39 = vector.broadcast %12 : vector<1x128xf32> to vector<8x128xf32>
    %40 = arith.mulf %0, %39 : vector<8x128xf32>
    %cst_7 = arith.constant dense<0.000000e+00> : vector<8xf32>
    %41 = vector.multi_reduction <add>, %40, %cst_7 [1] : vector<8x128xf32> to vector<8xf32>
    %42 = vector.shape_cast %41 : vector<8xf32> to vector<8x1xf32>
    %cst_8 = arith.constant 0.0833333358 : f32
    %43 = vector.broadcast %cst_8 : f32 to vector<8x1xf32>
    %44 = arith.mulf %42, %43 : vector<8x1xf32>
    %45 = vector.broadcast %44 : vector<8x1xf32> to vector<8x128xf32>
    %46 = arith.subf %0, %45 : vector<8x128xf32>
    %47 = vector.broadcast %12 : vector<1x128xf32> to vector<8x128xf32>
    %48 = arith.mulf %46, %47 : vector<8x128xf32>
    %49 = arith.mulf %48, %48 : vector<8x128xf32>
    %cst_9 = arith.constant dense<0.000000e+00> : vector<8xf32>
    %50 = vector.multi_reduction <add>, %49, %cst_9 [1] : vector<8x128xf32> to vector<8xf32>
    %51 = vector.shape_cast %50 : vector<8xf32> to vector<8x1xf32>
    %cst_10 = arith.constant 0.0833333358 : f32
    %52 = vector.broadcast %cst_10 : f32 to vector<8x1xf32>
    %53 = arith.mulf %51, %52 : vector<8x1xf32>
    %cst_11 = arith.constant 9.99999974E-6 : f32
    %54 = vector.broadcast %cst_11 : f32 to vector<8x1xf32>
    %55 = arith.addf %53, %54 : vector<8x1xf32>
    %56 = math.rsqrt %55 : vector<8x1xf32>
    %57 = vector.broadcast %56 : vector<8x1xf32> to vector<8x128xf32>
    %58 = arith.mulf %48, %57 : vector<8x128xf32>
    %59 = arith.addf %38, %58 : vector<8x128xf32>
    %60 = arith.truncf %59 : vector<8x128xf32> to vector<8x128xbf16>
    %c0_12 = arith.constant 0 : index
    %c0_13 = arith.constant 0 : index
    %61 = vector.load %arg2[%c0_12, %c0_13] : memref<128x128xbf16, #tpu.memory_space<vmem>>, vector<128x128xbf16>
    %cst_14 = arith.constant dense<0.000000e+00> : vector<8x128xf32>
    %62 = tpu.matmul %60, %61, %cst_14 {dimension_numbers = #tpu.dot_dimension_numbers<[1], [0], [0], [1], [0, 0, 1, 1], [], []>} : vector<8x128xbf16>, vector<128x128xbf16>, vector<8x128xf32> -> vector<8x128xf32>
    %c0_15 = arith.constant 0 : index
    %c0_16 = arith.constant 0 : index
    %63 = vector.load %arg9[%c0_15, %c0_16] : memref<1x128xf32, #tpu.memory_space<vmem>>, vector<1x128xf32>
    %64 = vector.broadcast %63 : vector<1x128xf32> to vector<8x128xf32>
    %65 = arith.addf %62, %64 : vector<8x128xf32>
    %66 = math.tanh %65 : vector<8x128xf32>
    %67 = arith.truncf %66 : vector<8x128xf32> to vector<8x128xbf16>
    %c0_17 = arith.constant 0 : index
    %c0_18 = arith.constant 0 : index
    %68 = vector.load %arg3[%c0_17, %c0_18] : memref<128x128xbf16, #tpu.memory_space<vmem>>, vector<128x128xbf16>
    %cst_19 = arith.constant dense<0.000000e+00> : vector<8x128xf32>
    %69 = tpu.matmul %67, %68, %cst_19 {dimension_numbers = #tpu.dot_dimension_numbers<[1], [0], [0], [1], [0, 0, 1, 1], [], []>} : vector<8x128xbf16>, vector<128x128xbf16>, vector<8x128xf32> -> vector<8x128xf32>
    %c0_20 = arith.constant 0 : index
    %c0_21 = arith.constant 0 : index
    %70 = vector.load %arg10[%c0_20, %c0_21] : memref<1x128xf32, #tpu.memory_space<vmem>>, vector<1x128xf32>
    %71 = vector.broadcast %70 : vector<1x128xf32> to vector<8x128xf32>
    %72 = arith.addf %69, %71 : vector<8x128xf32>
    %73 = math.tanh %72 : vector<8x128xf32>
    %74 = arith.truncf %73 : vector<8x128xf32> to vector<8x128xbf16>
    %c0_22 = arith.constant 0 : index
    %c0_23 = arith.constant 0 : index
    %75 = vector.load %arg4[%c0_22, %c0_23] : memref<128x128xbf16, #tpu.memory_space<vmem>>, vector<128x128xbf16>
    %cst_24 = arith.constant dense<0.000000e+00> : vector<8x128xf32>
    %76 = tpu.matmul %74, %75, %cst_24 {dimension_numbers = #tpu.dot_dimension_numbers<[1], [0], [0], [1], [0, 0, 1, 1], [], []>} : vector<8x128xbf16>, vector<128x128xbf16>, vector<8x128xf32> -> vector<8x128xf32>
    %c0_25 = arith.constant 0 : index
    %c0_26 = arith.constant 0 : index
    %77 = vector.load %arg11[%c0_25, %c0_26] : memref<1x128xf32, #tpu.memory_space<vmem>>, vector<1x128xf32>
    %78 = vector.broadcast %77 : vector<1x128xf32> to vector<8x128xf32>
    %79 = arith.addf %76, %78 : vector<8x128xf32>
    %80 = math.tanh %79 : vector<8x128xf32>
    %81 = arith.truncf %80 : vector<8x128xf32> to vector<8x128xbf16>
    %c0_27 = arith.constant 0 : index
    %c0_28 = arith.constant 0 : index
    %82 = vector.load %arg5[%c0_27, %c0_28] : memref<128x128xbf16, #tpu.memory_space<vmem>>, vector<128x128xbf16>
    %cst_29 = arith.constant dense<0.000000e+00> : vector<8x128xf32>
    %83 = tpu.matmul %81, %82, %cst_29 {dimension_numbers = #tpu.dot_dimension_numbers<[1], [0], [0], [1], [0, 0, 1, 1], [], []>} : vector<8x128xbf16>, vector<128x128xbf16>, vector<8x128xf32> -> vector<8x128xf32>
    %c0_30 = arith.constant 0 : index
    %c0_31 = arith.constant 0 : index
    %84 = vector.load %arg12[%c0_30, %c0_31] : memref<1x128xf32, #tpu.memory_space<vmem>>, vector<1x128xf32>
    %85 = vector.broadcast %84 : vector<1x128xf32> to vector<8x128xf32>
    %86 = arith.addf %83, %85 : vector<8x128xf32>
    %87 = math.tanh %86 : vector<8x128xf32>
    %88 = arith.truncf %87 : vector<8x128xf32> to vector<8x128xbf16>
    %c0_32 = arith.constant 0 : index
    %c0_33 = arith.constant 0 : index
    %89 = vector.load %arg6[%c0_32, %c0_33] : memref<128x128xbf16, #tpu.memory_space<vmem>>, vector<128x128xbf16>
    %cst_34 = arith.constant dense<0.000000e+00> : vector<8x128xf32>
    %90 = tpu.matmul %88, %89, %cst_34 {dimension_numbers = #tpu.dot_dimension_numbers<[1], [0], [0], [1], [0, 0, 1, 1], [], []>} : vector<8x128xbf16>, vector<128x128xbf16>, vector<8x128xf32> -> vector<8x128xf32>
    %c0_35 = arith.constant 0 : index
    %c0_36 = arith.constant 0 : index
    %91 = vector.load %arg13[%c0_35, %c0_36] : memref<1x128xf32, #tpu.memory_space<vmem>>, vector<1x128xf32>
    %92 = vector.broadcast %91 : vector<1x128xf32> to vector<8x128xf32>
    %93 = arith.addf %90, %92 : vector<8x128xf32>
    %94 = math.tanh %93 : vector<8x128xf32>
    %95 = arith.truncf %94 : vector<8x128xf32> to vector<8x128xbf16>
    %c0_37 = arith.constant 0 : index
    %c0_38 = arith.constant 0 : index
    %96 = vector.load %arg7[%c0_37, %c0_38] : memref<128x128xbf16, #tpu.memory_space<vmem>>, vector<128x128xbf16>
    %cst_39 = arith.constant dense<0.000000e+00> : vector<8x128xf32>
    %97 = tpu.matmul %95, %96, %cst_39 {dimension_numbers = #tpu.dot_dimension_numbers<[1], [0], [0], [1], [0, 0, 1, 1], [], []>} : vector<8x128xbf16>, vector<128x128xbf16>, vector<8x128xf32> -> vector<8x128xf32>
    %c0_40 = arith.constant 0 : index
    %c0_41 = arith.constant 0 : index
    %98 = vector.load %arg14[%c0_40, %c0_41] : memref<1x128xf32, #tpu.memory_space<vmem>>, vector<1x128xf32>
    %99 = vector.broadcast %98 : vector<1x128xf32> to vector<8x128xf32>
    %100 = arith.addf %97, %99 : vector<8x128xf32>
    %101 = math.tanh %100 : vector<8x128xf32>
    %102 = arith.truncf %101 : vector<8x128xf32> to vector<8x128xbf16>
    %c0_42 = arith.constant 0 : index
    %c0_43 = arith.constant 0 : index
    %103 = vector.load %arg8[%c0_42, %c0_43] : memref<128x128xbf16, #tpu.memory_space<vmem>>, vector<128x128xbf16>
    %cst_44 = arith.constant dense<0.000000e+00> : vector<8x128xf32>
    %104 = tpu.matmul %102, %103, %cst_44 {dimension_numbers = #tpu.dot_dimension_numbers<[1], [0], [0], [1], [0, 0, 1, 1], [], []>} : vector<8x128xbf16>, vector<128x128xbf16>, vector<8x128xf32> -> vector<8x128xf32>
    %c0_45 = arith.constant 0 : index
    %c0_46 = arith.constant 0 : index
    %105 = vector.load %arg15[%c0_45, %c0_46] : memref<1x128xf32, #tpu.memory_space<vmem>>, vector<1x128xf32>
    %106 = vector.broadcast %105 : vector<1x128xf32> to vector<8x128xf32>
    %107 = arith.addf %104, %106 : vector<8x128xf32>
    %c0_47 = arith.constant 0 : index
    %c0_48 = arith.constant 0 : index
    %108 = vector.load %arg16[%c0_47, %c0_48] : memref<8x128xf32, #tpu.memory_space<vmem>>, vector<8x128xf32>
    tpu.vector_store %arg16[%c0_47, %c0_48], %107 {strides = array<i32>} : memref<8x128xf32, #tpu.memory_space<vmem>>, vector<8x128xf32>,
    return
  }
  func.func @transform_0(%arg0: i32) -> (i32, i32) {
    %c0_i32 = arith.constant 0 : i32
    %c0_i32_0 = arith.constant 0 : i32
    return %arg0, %c0_i32 : i32, i32
  }
  func.func @transform_1(%arg0: i32) -> (i32, i32) {
    %c0_i32 = arith.constant 0 : i32
    %c0_i32_0 = arith.constant 0 : i32
    %c0_i32_1 = arith.constant 0 : i32
    return %c0_i32, %c0_i32_0 : i32, i32
  }
  func.func @transform_2(%arg0: i32) -> (i32, i32) {
    %c0_i32 = arith.constant 0 : i32
    %c0_i32_0 = arith.constant 0 : i32
    %c0_i32_1 = arith.constant 0 : i32
    return %c0_i32, %c0_i32_0 : i32, i32
  }
  func.func @transform_3(%arg0: i32) -> (i32, i32) {
    %c0_i32 = arith.constant 0 : i32
    %c0_i32_0 = arith.constant 0 : i32
    %c0_i32_1 = arith.constant 0 : i32
    return %c0_i32, %c0_i32_0 : i32, i32
  }
  func.func @transform_4(%arg0: i32) -> (i32, i32) {
    %c0_i32 = arith.constant 0 : i32
    %c0_i32_0 = arith.constant 0 : i32
    %c0_i32_1 = arith.constant 0 : i32
    return %c0_i32, %c0_i32_0 : i32, i32
  }
  func.func @transform_5(%arg0: i32) -> (i32, i32) {
    %c0_i32 = arith.constant 0 : i32
    %c0_i32_0 = arith.constant 0 : i32
    %c0_i32_1 = arith.constant 0 : i32
    return %c0_i32, %c0_i32_0 : i32, i32
  }
  func.func @transform_6(%arg0: i32) -> (i32, i32) {
    %c0_i32 = arith.constant 0 : i32
    %c0_i32_0 = arith.constant 0 : i32
    %c0_i32_1 = arith.constant 0 : i32
    return %c0_i32, %c0_i32_0 : i32, i32
  }
  func.func @transform_7(%arg0: i32) -> (i32, i32) {
    %c0_i32 = arith.constant 0 : i32
    %c0_i32_0 = arith.constant 0 : i32
    %c0_i32_1 = arith.constant 0 : i32
    return %c0_i32, %c0_i32_0 : i32, i32
  }
  func.func @transform_8(%arg0: i32) -> (i32, i32) {
    %c0_i32 = arith.constant 0 : i32
    %c0_i32_0 = arith.constant 0 : i32
    %c0_i32_1 = arith.constant 0 : i32
    return %c0_i32, %c0_i32_0 : i32, i32
  }
  func.func @transform_9(%arg0: i32) -> (i32, i32) {
    %c0_i32 = arith.constant 0 : i32
    %c0_i32_0 = arith.constant 0 : i32
    %c0_i32_1 = arith.constant 0 : i32
    return %c0_i32, %c0_i32_0 : i32, i32
  }
  func.func @transform_10(%arg0: i32) -> (i32, i32) {
    %c0_i32 = arith.constant 0 : i32
    %c0_i32_0 = arith.constant 0 : i32
    %c0_i32_1 = arith.constant 0 : i32
    return %c0_i32, %c0_i32_0 : i32, i32
  }
  func.func @transform_11(%arg0: i32) -> (i32, i32) {
    %c0_i32 = arith.constant 0 : i32
    %c0_i32_0 = arith.constant 0 : i32
    %c0_i32_1 = arith.constant 0 : i32
    return %c0_i32, %c0_i32_0 : i32, i32
  }
  func.func @transform_12(%arg0: i32) -> (i32, i32) {
    %c0_i32 = arith.constant 0 : i32
    %c0_i32_0 = arith.constant 0 : i32
    %c0_i32_1 = arith.constant 0 : i32
    return %c0_i32, %c0_i32_0 : i32, i32
  }
  func.func @transform_13(%arg0: i32) -> (i32, i32) {
    %c0_i32 = arith.constant 0 : i32
    %c0_i32_0 = arith.constant 0 : i32
    %c0_i32_1 = arith.constant 0 : i32
    return %c0_i32, %c0_i32_0 : i32, i32
  }
  func.func @transform_14(%arg0: i32) -> (i32, i32) {
    %c0_i32 = arith.constant 0 : i32
    %c0_i32_0 = arith.constant 0 : i32
    %c0_i32_1 = arith.constant 0 : i32
    return %c0_i32, %c0_i32_0 : i32, i32
  }
  func.func @transform_15(%arg0: i32) -> (i32, i32) {
    %c0_i32 = arith.constant 0 : i32
    %c0_i32_0 = arith.constant 0 : i32
    return %arg0, %c0_i32 : i32, i32
  }
}

</mosaic_0001>

<bundles_post_ra>
// kernel: _forward_impl.1
= control target key start
LH: loop header
LB: loop body
LE: loop exit
PB: predicated region body
PF: predicated region fallthrough
CT: control target
= control target key end

     0   :  { %20 = vsyncpa [#allocation3], 0  ;;  %s1470_s0 = inlined_call_operand.vmem [shape: f32[8,128], index: 0, kind: input, shape index: {}]   ;;  %s1471_s1 = inlined_call_operand.hbm [shape: bf16[128,128], index: 1, kind: input, shape index: {}]   ;;  %s1472_s2 = inlined_call_operand.hbm [shape: bf16[128,128], index: 2, kind: input, shape index: {}]   ;;  %s1473_s3 = inlined_call_operand.hbm [shape: bf16[128,128], index: 3, kind: input, shape index: {}]   ;;  %s1474_s4 = inlined_call_operand.hbm [shape: bf16[128,128], index: 4, kind: input, shape index: {}]   ;;  %s1475_s5 = inlined_call_operand.hbm [shape: bf16[128,128], index: 5, kind: input, shape index: {}]   ;;  %s1476_s6 = inlined_call_operand.hbm [shape: bf16[128,128], index: 6, kind: input, shape index: {}]   ;;  %s1477_s7 = inlined_call_operand.hbm [shape: bf16[128,128], index: 7, kind: input, shape index: {}]   ;;  %s1478_s8 = inlined_call_operand.vmem [shape: f32[1,128], index: 8, kind: input, shape index: {}]   ;;  %s1479_s9 = inlined_call_operand.vmem [shape: f32[1,128], index: 9, kind: input, shape index: {}]   ;;  %s1480_s10 = inlined_call_operand.vmem [shape: f32[1,128], index: 10, kind: input, shape index: {}]   ;;  %s1481_s11 = inlined_call_operand.vmem [shape: f32[1,128], index: 11, kind: input, shape index: {}]   ;;  %s1482_s12 = inlined_call_operand.vmem [shape: f32[1,128], index: 12, kind: input, shape index: {}]   ;;  %s1483_s13 = inlined_call_operand.vmem [shape: f32[1,128], index: 13, kind: input, shape index: {}]   ;;  %s1484_s14 = inlined_call_operand.vmem [shape: f32[1,128], index: 14, kind: input, shape index: {}]   ;;  %s1485_s15 = inlined_call_operand.vmem [shape: f32[8,128], index: 15, kind: output, shape index: {}]  }
   0x1   :  { %21 = vsyncpa [#allocation5], 0 }
   0x2   :  { %22 = vsyncpa [#allocation8], 0 }
   0x3   :  { %23 = vsyncpa [#allocation11], 0  ;;  %s43_s20 = sshll.u32 %s1472_s2, 4  ;;  %s1299_s21 = smov [#allocation4]   ;;  %s44_s20 = int_to_ptr.hbm [resolvable:$true] %s43_s20 }
   0x4   :  { %s45_s22 = sshll.u32 %s1299_s21, 4  ;;  %s69_s25 = sshll.u32 %s1474_s4, 4  ;;  %s46_s22 = int_to_ptr.vmem [resolvable:$true] %s45_s22  ;;  %s70_s25 = int_to_ptr.hbm [resolvable:$true] %s69_s25 }
   0x5   :  { %s1300_s26 = smov 64   ;;  %s1301_s27 = smov 4  }
   0x6   :  { %51 = dma.hbm_to_vmem [thread:$0]  %s44_s20, 1024, %s46_s22, [#allocation5], %s1300_s26, %s1300_s26, %s1301_s27  }
   0x7   :  { %s1302_s28 = smov [#allocation7]   ;;  %s95_s2 = sshll.u32 %s1476_s6, 4  ;;  %s96_s2 = int_to_ptr.hbm [resolvable:$true] %s95_s2 }
   0x8   :  { %s71_s29 = sshll.u32 %s1302_s28, 4  ;;  %s30_s18 = sshll.u32 %s1471_s1, 4  ;;  %s72_s29 = int_to_ptr.vmem [resolvable:$true] %s71_s29  ;;  %s31_s18 = int_to_ptr.hbm [resolvable:$true] %s30_s18 }
   0x9   :  { %77 = dma.hbm_to_vmem [thread:$0]  %s70_s25, 1024, %s72_s29, [#allocation8], %s1300_s26, %s1300_s26, %s1301_s27  }
   0xa   :  { %s1303_s19 = smov [#allocation10]   ;;  %s1304_s20 = smov [#allocation2]  }
   0xb   :  { %s97_s21 = sshll.u32 %s1303_s19, 4  ;;  %s32_s6 = sshll.u32 %s1304_s20, 4  ;;  %s98_s21 = int_to_ptr.vmem [resolvable:$true] %s97_s21  ;;  %s33_s6 = int_to_ptr.vmem [resolvable:$true] %s32_s6 }
   0xc   :  { %103 = dma.hbm_to_vmem [thread:$0]  %s96_s2, 1024, %s98_s21, [#allocation11], %s1300_s26, %s1300_s26, %s1301_s27  }
   0xd   :  { %s56_s24 = sshll.u32 %s1473_s3, 4  ;;  %s82_s28 = sshll.u32 %s1475_s5, 4  ;;  %s57_s24 = int_to_ptr.hbm [resolvable:$true] %s56_s24  ;;  %s83_s28 = int_to_ptr.hbm [resolvable:$true] %s82_s28 }
   0xe   :  { %38 = dma.hbm_to_vmem [thread:$0]  %s31_s18, 1024, %s33_s6, [#allocation3], %s1300_s26, %s1300_s26, %s1301_s27  }
   0xf   :  { %s1305_s29 = smov [#allocation6]   ;;  %s1306_s16 = smov [#allocation9]  }
  0x10   :  { %s58_s30 = sshll.u32 %s1305_s29, 4  ;;  %s84_s3 = sshll.u32 %s1306_s16, 4  ;;  %s59_s30 = int_to_ptr.vmem [resolvable:$true] %s58_s30  ;;  %s85_s3 = int_to_ptr.vmem [resolvable:$true] %s84_s3 }
  0x11   :  { %64 = dma.hbm_to_vmem [thread:$0]  %s57_s24, 1024, %s59_s30, [#allocation5], %s1300_s26, %s1300_s26, %s1301_s27  }
  0x12   :  { %s108_s17 = sshll.u32 %s1477_s7, 4  ;;  %s1307_s5 = smov [#allocation12]   ;;  %s109_s17 = int_to_ptr.hbm [resolvable:$true] %s108_s17 }
  0x13   :  { %90 = dma.hbm_to_vmem [thread:$0]  %s83_s28, 1024, %s85_s3, [#allocation8], %s1300_s26, %s1300_s26, %s1301_s27  }
  0x14   :  { %s110_s18 = sshll.u32 %s1307_s5, 4  ;;  %s111_s18 = int_to_ptr.vmem [resolvable:$true] %s110_s18 }
  0x15   :  { %116 = dma.hbm_to_vmem [thread:$0]  %s109_s17, 1024, %s111_s18, [#allocation11], %s1300_s26, %s1300_s26, %s1301_s27  }
  0x16   :  { %1291 = dma.done.wait [#allocation3], 1024  }
  0x17   :  { %1292 = vsyncadd [#allocation3], 4294966272 }
  0x18   :  { %1293 = dma.done.wait [#allocation5], 2048  }
  0x19   :  { %1294 = vsyncadd [#allocation5], 4294965248 }
  0x1a   :  { %1295 = dma.done.wait [#allocation8], 2048  }
  0x1b   :  { %1296 = vsyncadd [#allocation8], 4294965248 }
  0x1c   :  { %1297 = dma.done.wait [#allocation11], 2048  }
  0x1d   :  { %1298 = vsyncadd [#allocation11], 4294965248  ;;  %v160_v0 = vlaneseq  ;;  %v1308_v2 = vmov 0.0   ;;  %v1436_v4 = vld [vmem:[%s1470_s0] sm:$0xff]  ;;  %v1041_v18 = vld [vmem:[#allocation2 + $0x38] sm:$0xff] }
  0x1e   :  { %288 = vmatpush.bf16.msra.mxu0 %v1041_v18  ;;  %v1040_v19 = vld [vmem:[#allocation2 + $0x30] sm:$0xff]  ;;  %v1039_v20 = vld [vmem:[#allocation2 + $0x28] sm:$0xff]  ;;  %v1038_v21 = vld [vmem:[#allocation2 + $0x20] sm:$0xff] }
  0x1f   :  { %v161_v1 = vand.u32 127, %v160_v0  ;;  %v1037_v22 = vld [vmem:[#allocation2 + $0x18] sm:$0xff]  ;;  %v1036_v23 = vld [vmem:[#allocation2 + $0x10] sm:$0xff]  ;;  %v1035_v24 = vld [vmem:[#allocation2 + $0x8] sm:$0xff] }
  0x20   :  { %v1034_v25 = vld [vmem:[#allocation2] sm:$0xff]  ;;  %v1049_v29 = vld [vmem:[#allocation4 + $0x38] sm:$0xff]  ;;  %v1048_v30 = vld [vmem:[#allocation4 + $0x30] sm:$0xff] }
  0x21   :  { %vm162_vm0 = vcmp.lt.s32.totalorder %v161_v1, 8  ;;  %vm165_vm1 = vcmp.ge.s32.totalorder %v161_v1, 8  ;;  %vm166_vm2 = vcmp.lt.s32.totalorder %v161_v1, 20  ;;  %371 = vmatpush.bf16.msra.mxu1 %v1049_v29  ;;  %v1047_v35 = vld [vmem:[#allocation4 + $0x28] sm:$0xff]  ;;  %v1046_v38 = vld [vmem:[#allocation4 + $0x20] sm:$0xff]  ;;  %v1045_v43 = vld [vmem:[#allocation4 + $0x18] sm:$0xff] }
  0x22   :  { %v1431_v3 = vsel %vm162_vm0, 1.0, %v1308_v2  ;;  %vm167_vm3 = vmand %vm165_vm1, %vm166_vm2  ;;  %289 = vmatpush.bf16.msra.mxu0 %v1040_v19  ;;  %v1044_v59 = vld [vmem:[#allocation4 + $0x10] sm:$0xff]  ;;  %v1043_v60 = vld [vmem:[#allocation4 + $0x8] sm:$0xff] }
  0x23   :  { %v173_v5 = vmul.f32 %v1431_v3, %v1436_v4  ;;  %v809_v6 = vsel %vm167_vm3, 1.0, %v1308_v2  ;;  %v170_v42 = vsub.f32 1.0, %v1431_v3  ;;  %v1042_v61 = vld [vmem:[#allocation4] sm:$0xff]  ;;  %v1057_v62 = vld [vmem:[#allocation6 + $0x38] sm:$0xff]  ;;  %v1056_v63 = vld [vmem:[#allocation6 + $0x30] sm:$0xff] }
  0x24   :  { %v196_v7 = vmul.f32 %v809_v6, %v1436_v4  ;;  %454 = vmatpush.bf16.msra.mxu2 %v1057_v62  ;;  %v1055_v0 = vld [vmem:[#allocation6 + $0x28] sm:$0xff]  ;;  %v1054_v1 = vld [vmem:[#allocation6 + $0x20] sm:$0xff]  ;;  %v1053_v2 = vld [vmem:[#allocation6 + $0x18] sm:$0xff] }
  0x25   :  { %174 = vadd.xlane.f32.xlu0 %v173_v5  ;;  %372 = vmatpush.bf16.msra.mxu1 %v1048_v30  ;;  %v171_v47 = vsub.f32 %v170_v42, %v809_v6  ;;  %v1070_v29 = vld [vmem:[#allocation9 + $0x20] sm:$0xff]  ;;  %v1069_v30 = vld [vmem:[#allocation9 + $0x18] sm:$0xff]  ;;  %v1079_v42 = vld [vmem:[#allocation10 + $0x28] sm:$0xff] }
  0x26   :  { %290 = vmatpush.bf16.msra.mxu0 %v1039_v20 }
  0x27   :  { %v172_v51 = vmul.f32 %v171_v47, %v1436_v4 }
  0x28   :  { %455 = vmatpush.bf16.msra.mxu2 %v1056_v63 }
  0x29   :  { %373 = vmatpush.bf16.msra.mxu1 %v1047_v35 }
  0x2a   :  { %291 = vmatpush.bf16.msra.mxu0 %v1038_v21 }
  0x2c   :  { %456 = vmatpush.bf16.msra.mxu2 %v1055_v0 }
  0x2d   :  { %197 = vadd.xlane.f32.xlu0 %v196_v7  ;;  %374 = vmatpush.bf16.msra.mxu1 %v1046_v38  ;;  %v1067_v38 = vld [vmem:[#allocation9 + $0x8] sm:$0xff] }
  0x2e   :  { %292 = vmatpush.bf16.msra.mxu0 %v1037_v22 }
  0x30   :  { %457 = vmatpush.bf16.msra.mxu2 %v1054_v1  ;;  %v1084_v1 = vld [vmem:[#allocation12 + $0x10] sm:$0xff] }
  0x31   :  { %375 = vmatpush.bf16.msra.mxu1 %v1045_v43  ;;  %v1078_v43 = vld [vmem:[#allocation10 + $0x20] sm:$0xff] }
  0x32   :  { %293 = vmatpush.bf16.msra.mxu0 %v1036_v23  ;;  %v1060_v23 = vld [vmem:[#allocation7 + $0x10] sm:$0xff] }
  0x34   :  { %458 = vmatpush.bf16.msra.mxu2 %v1053_v2  ;;  %v1083_v2 = vld [vmem:[#allocation12 + $0x8] sm:$0xff] }
  0x35   :  { %376 = vmatpush.bf16.msra.mxu1 %v1044_v59  ;;  %v1104_v59 = vld [vmem:[%s1482_s12] ss:$0 sm:$0xff] }
  0x36   :  { %294 = vmatpush.bf16.msra.mxu0 %v1035_v24  ;;  %v1059_v24 = vld [vmem:[#allocation7 + $0x8] sm:$0xff] }
  0x39   :  { %377 = vmatpush.bf16.msra.mxu1 %v1043_v60 }
  0x3a   :  { %295 = vmatpush.bf16.msra.mxu0 %v1034_v25  ;;  %v1058_v25 = vld [vmem:[#allocation7] sm:$0xff] }
  0x3d   :  { %378 = vmatpush.bf16.msra.mxu1 %v1042_v61 }
  0x98   :  { %v175_v8 = vpop.xlane.xlu0 %174 }
  0x99   :  { %v176_v9 = vmul.f32 0.125, %v175_v8 }
  0x9b   :  { %v177_v10 = vsub.f32 %v1436_v4, %v176_v9  ;;  %v1052_v9 = vld [vmem:[#allocation6 + $0x10] sm:$0xff] }
  0x9c   :  { %459 = vmatpush.bf16.msra.mxu2 %v1052_v9 }
  0x9d   :  { %v178_v11 = vmul.f32 %v1431_v3, %v177_v10  ;;  %v1100_v3 = vld [vmem:[%s1478_s8] ss:$0 sm:$0xff]  ;;  %v1051_v10 = vld [vmem:[#allocation6 + $0x8] sm:$0xff] }
  0x9f   :  { %v179_v12 = vmul.f32 %v178_v11, %v178_v11 }
  0xa0   :  { %v198_v13 = vpop.xlane.xlu0 %197  ;;  %460 = vmatpush.bf16.msra.mxu2 %v1051_v10  ;;  %v1106_v10 = vld [vmem:[%s1484_s14] ss:$0 sm:$0xff] }
  0xa1   :  { %v199_v14 = vmul.f32 0.083333336, %v198_v13  ;;  %180 = vadd.xlane.f32.xlu1 %v179_v12  ;;  %v1065_v12 = vld [vmem:[#allocation7 + $0x38] sm:$0xff]  ;;  %v1064_v13 = vld [vmem:[#allocation7 + $0x30] sm:$0xff] }
  0xa2   :  { %537 = vmatpush.bf16.msra.mxu3 %v1065_v12 }
  0xa3   :  { %v200_v15 = vsub.f32 %v1436_v4, %v199_v14  ;;  %v1063_v14 = vld [vmem:[#allocation7 + $0x28] sm:$0xff] }
  0xa5   :  { %v201_v16 = vmul.f32 %v809_v6, %v200_v15  ;;  %v1062_v15 = vld [vmem:[#allocation7 + $0x20] sm:$0xff] }
  0xa6   :  { %538 = vmatpush.bf16.msra.mxu3 %v1064_v13 }
  0xa7   :  { %v202_v17 = vmul.f32 %v201_v16, %v201_v16 }
  0xa9   :  { %203 = vadd.xlane.f32.xlu1 %v202_v17  ;;  %v1101_v17 = vld [vmem:[%s1479_s9] ss:$0 sm:$0xff] }
  0xaa   :  { %539 = vmatpush.bf16.msra.mxu3 %v1063_v14 }
  0xae   :  { %540 = vmatpush.bf16.msra.mxu3 %v1062_v15 }
 0x114   :  { %v181_v26 = vpop.xlane.xlu1 %180 }
 0x115   :  { %v182_v27 = vmul.f32 0.125, %v181_v26  ;;  %v1073_v26 = vld [vmem:[#allocation9 + $0x38] sm:$0xff] }
 0x116   :  { %620 = vmatpush.bf16.msrb.mxu0 %v1073_v26 }
 0x117   :  { %v183_v28 = vadd.f32 1e-05, %v182_v27  ;;  %v1072_v27 = vld [vmem:[#allocation9 + $0x30] sm:$0xff] }
 0x119   :  { %1107 = vrsqrt.f32 %v183_v28  ;;  %vm190_vm5 = vweird.f32 %v183_v28 }
 0x11a   :  { %621 = vmatpush.bf16.msrb.mxu0 %v1072_v27 }
 0x11c   :  { %v204_v31 = vpop.xlane.xlu1 %203 }
 0x11d   :  { %v205_v32 = vmul.f32 0.083333336, %v204_v31  ;;  %v1102_v31 = vld [vmem:[%s1480_s10] ss:$0 sm:$0xff] }
 0x11f   :  { %v1108_v33 = vpop.eup %1107  ;;  %v206_v34 = vadd.f32 1e-05, %v205_v32 }
 0x120   :  { %v185_v36 = vmul.f32 %v1108_v33, %v183_v28  ;;  %vm191_vm4 = vweird.f32 %v1108_v33  ;;  %v1071_v28 = vld [vmem:[#allocation9 + $0x28] sm:$0xff] }
 0x121   :  { %1109 = vrsqrt.f32 %v206_v34  ;;  %vm192_vm6 = vmor %vm190_vm5, %vm191_vm4  ;;  %vm213_vm8 = vweird.f32 %v206_v34  ;;  %622 = vmatpush.bf16.msrb.mxu0 %v1071_v28 }
 0x122   :  { %v186_v37 = vmul.f32 %v1108_v33, %v185_v36 }
 0x124   :  { %v187_v39 = vmul.f32 0.5, %v186_v37  ;;  %v1068_v37 = vld [vmem:[#allocation9 + $0x10] sm:$0xff] }
 0x125   :  { %623 = vmatpush.bf16.msrb.mxu0 %v1070_v29 }
 0x126   :  { %v188_v40 = vsub.f32 1.5, %v187_v39  ;;  %v1066_v39 = vld [vmem:[#allocation9] sm:$0xff] }
 0x127   :  { %v1110_v41 = vpop.eup %1109 }
 0x128   :  { %v189_v44 = vmul.f32 %v1108_v33, %v188_v40  ;;  %v208_v45 = vmul.f32 %v1110_v41, %v206_v34  ;;  %vm214_vm7 = vweird.f32 %v1110_v41  ;;  %v1081_v40 = vld [vmem:[#allocation10 + $0x38] sm:$0xff] }
 0x129   :  { %vm215_vm9 = vmor %vm213_vm8, %vm214_vm7  ;;  %624 = vmatpush.bf16.msrb.mxu0 %v1069_v30  ;;  %703 = vmatpush.bf16.msrb.mxu1 %v1081_v40 }
 0x12a   :  { %v209_v46 = vmul.f32 %v1110_v41, %v208_v45  ;;  %v193_v49 = vsel %vm192_vm6, %v1108_v33, %v189_v44  ;;  %v1077_v44 = vld [vmem:[#allocation10 + $0x18] sm:$0xff]  ;;  %v1103_v45 = vld [vmem:[%s1481_s11] ss:$0 sm:$0xff] }
 0x12b   :  { %v194_v52 = vmul.f32 %v193_v49, %v178_v11  ;;  %v1050_v11 = vld [vmem:[#allocation6] sm:$0xff] }
 0x12c   :  { %v210_v48 = vmul.f32 0.5, %v209_v46  ;;  %461 = vmatpush.bf16.msra.mxu2 %v1050_v11 }
 0x12d   :  { %v195_v55 = vadd.f32 %v194_v52, %v172_v51  ;;  %625 = vmatpush.bf16.msrb.mxu0 %v1068_v37  ;;  %v1076_v51 = vld [vmem:[#allocation10 + $0x10] sm:$0xff]  ;;  %v1075_v52 = vld [vmem:[#allocation10 + $0x8] sm:$0xff] }
 0x12e   :  { %v211_v50 = vsub.f32 1.5, %v210_v48 }
 0x130   :  { %v212_v53 = vmul.f32 %v1110_v41, %v211_v50 }
 0x131   :  { %626 = vmatpush.bf16.msrb.mxu0 %v1067_v38 }
 0x132   :  { %v216_v54 = vsel %vm215_vm9, %v1110_v41, %v212_v53  ;;  %v1080_v41 = vld [vmem:[#allocation10 + $0x30] sm:$0xff]  ;;  %v1074_v53 = vld [vmem:[#allocation10] sm:$0xff] }
 0x133   :  { %v217_v56 = vmul.f32 %v216_v54, %v201_v16  ;;  %v1061_v16 = vld [vmem:[#allocation7 + $0x18] sm:$0xff]  ;;  %704 = vmatpush.bf16.msrb.mxu1 %v1080_v41 }
 0x134   :  { %541 = vmatpush.bf16.msra.mxu3 %v1061_v16  ;;  %v1089_v54 = vld [vmem:[#allocation12 + $0x38] sm:$0xff] }
 0x135   :  { %v218_v57 = vadd.f32 %v217_v56, %v195_v55  ;;  %627 = vmatpush.bf16.msrb.mxu0 %v1066_v39  ;;  %786 = vmatpush.bf16.msrb.mxu2 %v1089_v54  ;;  %v1088_v55 = vld [vmem:[#allocation12 + $0x30] sm:$0xff]  ;;  %v1087_v56 = vld [vmem:[#allocation12 + $0x28] sm:$0xff] }
 0x137   :  { %v219_v58 = vpack.c.bf16 %v218_v57, %v218_v57  ;;  %705 = vmatpush.bf16.msrb.mxu1 %v1079_v42  ;;  %v1086_v57 = vld [vmem:[#allocation12 + $0x20] sm:$0xff] }
 0x138   :  { %542 = vmatpush.bf16.msra.mxu3 %v1060_v23 }
 0x139   :  { %296 = vmatmul.bf16.vlgmr.msra.gmra.mxu0 %v219_v58  ;;  %787 = vmatpush.bf16.msrb.mxu2 %v1088_v55  ;;  %v1085_v58 = vld [vmem:[#allocation12 + $0x18] sm:$0xff] }
 0x13b   :  { %706 = vmatpush.bf16.msrb.mxu1 %v1078_v43 }
 0x13c   :  { %543 = vmatpush.bf16.msra.mxu3 %v1059_v24 }
 0x13d   :  { %788 = vmatpush.bf16.msrb.mxu2 %v1087_v56 }
 0x13f   :  { %707 = vmatpush.bf16.msrb.mxu1 %v1077_v44 }
 0x140   :  { %544 = vmatpush.bf16.msra.mxu3 %v1058_v25 }
 0x141   :  { %789 = vmatpush.bf16.msrb.mxu2 %v1086_v57 }
 0x143   :  { %708 = vmatpush.bf16.msrb.mxu1 %v1076_v51 }
 0x145   :  { %790 = vmatpush.bf16.msrb.mxu2 %v1085_v58 }
 0x147   :  { %709 = vmatpush.bf16.msrb.mxu1 %v1075_v52 }
 0x149   :  { %791 = vmatpush.bf16.msrb.mxu2 %v1084_v1 }
 0x14b   :  { %710 = vmatpush.bf16.msrb.mxu1 %v1074_v53 }
 0x14d   :  { %792 = vmatpush.bf16.msrb.mxu2 %v1083_v2 }
 0x1b6   :  { %v297_v4 = vpop.f32.mrf.mxu0 }
 0x1b7   :  { %v298_v5 = vadd.f32 %v1100_v3, %v297_v4  ;;  %v1082_v3 = vld [vmem:[#allocation12] sm:$0xff] }
 0x1b8   :  { %793 = vmatpush.bf16.msrb.mxu2 %v1082_v3  ;;  %v1105_v4 = vld [vmem:[%s1483_s13] ss:$0 sm:$0xff] }
 0x1b9   :  { %1111 = vtanh.f32 %v298_v5 }
 0x1be   :  { %v299_v6 = vpop.f32.mrf.mxu0 }
 0x1bf   :  { %v1112_v7 = vpop.eup %1111 }
 0x1c0   :  { %v302_v8 = vpack.c.bf16 %v1112_v7, %v1112_v7 }
 0x1c2   :  { %379 = vmatmul.bf16.vlgmr.msra.gmra.mxu1 %v302_v8 }
 0x23f   :  { %v380_v18 = vpop.f32.mrf.mxu1 }
 0x240   :  { %v381_v19 = vadd.f32 %v1101_v17, %v380_v18 }
 0x242   :  { %1113 = vtanh.f32 %v381_v19 }
 0x247   :  { %v382_v20 = vpop.f32.mrf.mxu1 }
 0x248   :  { %v1114_v21 = vpop.eup %1113 }
 0x249   :  { %v385_v22 = vpack.c.bf16 %v1114_v21, %v1114_v21 }
 0x24b   :  { %462 = vmatmul.bf16.vlgmr.msra.gmra.mxu2 %v385_v22 }
 0x2ce   :  { %v463_v32 = vpop.f32.mrf.mxu2 }
 0x2cf   :  { %v464_v33 = vadd.f32 %v1102_v31, %v463_v32 }
 0x2d1   :  { %1115 = vtanh.f32 %v464_v33 }
 0x2d6   :  { %v465_v34 = vpop.f32.mrf.mxu2 }
 0x2d7   :  { %v1116_v35 = vpop.eup %1115 }
 0x2d8   :  { %v468_v36 = vpack.c.bf16 %v1116_v35, %v1116_v35 }
 0x2da   :  { %545 = vmatmul.bf16.vlgmr.msra.gmra.mxu3 %v468_v36 }
 0x35d   :  { %v546_v46 = vpop.f32.mrf.mxu3 }
 0x35e   :  { %v547_v47 = vadd.f32 %v1103_v45, %v546_v46 }
 0x360   :  { %1117 = vtanh.f32 %v547_v47 }
 0x365   :  { %v548_v48 = vpop.f32.mrf.mxu3 }
 0x366   :  { %v1118_v49 = vpop.eup %1117 }
 0x367   :  { %v551_v50 = vpack.c.bf16 %v1118_v49, %v1118_v49 }
 0x369   :  { %628 = vmatmul.bf16.vlgmr.msrb.gmra.mxu0 %v551_v50 }
 0x3e6   :  { %v629_v60 = vpop.f32.mrf.mxu0 }
 0x3e7   :  { %v630_v61 = vadd.f32 %v1104_v59, %v629_v60 }
 0x3e9   :  { %1119 = vtanh.f32 %v630_v61 }
 0x3ee   :  { %v631_v62 = vpop.f32.mrf.mxu0 }
 0x3ef   :  { %v1120_v63 = vpop.eup %1119 }
 0x3f0   :  { %v634_v0 = vpack.c.bf16 %v1120_v63, %v1120_v63 }
 0x3f2   :  { %711 = vmatmul.bf16.vlgmr.msrb.gmra.mxu1 %v634_v0 }
 0x46f   :  { %v712_v5 = vpop.f32.mrf.mxu1 }
 0x470   :  { %v713_v6 = vadd.f32 %v1105_v4, %v712_v5 }
 0x472   :  { %1121 = vtanh.f32 %v713_v6 }
 0x477   :  { %v714_v7 = vpop.f32.mrf.mxu1 }
 0x478   :  { %v1122_v8 = vpop.eup %1121 }
 0x479   :  { %v717_v9 = vpack.c.bf16 %v1122_v8, %v1122_v8 }
 0x47b   :  { %794 = vmatmul.bf16.vlgmr.msrb.gmra.mxu2 %v717_v9 }
 0x4fe   :  { %v795_v11 = vpop.f32.mrf.mxu2 }
 0x4ff   :  { %v796_v12 = vadd.f32 %v1106_v10, %v795_v11 }
 0x501   :  { %799 = vst [vmem:[%s1485_s15] sm:$0xff] %v796_v12 }
 0x506   :  { %v797_v13 = vpop.f32.mrf.mxu2 }
 0x507   :  { %804 = vsyncpa [#allocation3], 1 }
 0x508   :  { %805 = vsyncpa [#allocation5], 1 }
 0x509   :  { %806 = vsyncpa [#allocation8], 1 }
 0x50a   :  { %807 = vsyncpa [#allocation11], 1 }

// kernel: _forward_impl.1
= control target key start
LH: loop header
LB: loop body
LE: loop exit
PB: predicated region body
PF: predicated region fallthrough
CT: control target
= control target key end

     0   :  { %20 = vsyncpa [#allocation3], 0  ;;  %s1470_s0 = inlined_call_operand.vmem [shape: f32[8,128], index: 0, kind: input, shape index: {}]   ;;  %s1471_s1 = inlined_call_operand.hbm [shape: bf16[128,128], index: 1, kind: input, shape index: {}]   ;;  %s1472_s2 = inlined_call_operand.hbm [shape: bf16[128,128], index: 2, kind: input, shape index: {}]   ;;  %s1473_s3 = inlined_call_operand.hbm [shape: bf16[128,128], index: 3, kind: input, shape index: {}]   ;;  %s1474_s4 = inlined_call_operand.hbm [shape: bf16[128,128], index: 4, kind: input, shape index: {}]   ;;  %s1475_s5 = inlined_call_operand.hbm [shape: bf16[128,128], index: 5, kind: input, shape index: {}]   ;;  %s1476_s6 = inlined_call_operand.hbm [shape: bf16[128,128], index: 6, kind: input, shape index: {}]   ;;  %s1477_s7 = inlined_call_operand.hbm [shape: bf16[128,128], index: 7, kind: input, shape index: {}]   ;;  %s1478_s8 = inlined_call_operand.vmem [shape: f32[1,128], index: 8, kind: input, shape index: {}]   ;;  %s1479_s9 = inlined_call_operand.vmem [shape: f32[1,128], index: 9, kind: input, shape index: {}]   ;;  %s1480_s10 = inlined_call_operand.vmem [shape: f32[1,128], index: 10, kind: input, shape index: {}]   ;;  %s1481_s11 = inlined_call_operand.vmem [shape: f32[1,128], index: 11, kind: input, shape index: {}]   ;;  %s1482_s12 = inlined_call_operand.vmem [shape: f32[1,128], index: 12, kind: input, shape index: {}]   ;;  %s1483_s13 = inlined_call_operand.vmem [shape: f32[1,128], index: 13, kind: input, shape index: {}]   ;;  %s1484_s14 = inlined_call_operand.vmem [shape: f32[1,128], index: 14, kind: input, shape index: {}]   ;;  %s1485_s15 = inlined_call_operand.vmem [shape: f32[8,128], index: 15, kind: output, shape index: {}]  }
   0x1   :  { %21 = vsyncpa [#allocation5], 0 }
   0x2   :  { %22 = vsyncpa [#allocation8], 0 }
   0x3   :  { %23 = vsyncpa [#allocation11], 0  ;;  %s43_s20 = sshll.u32 %s1472_s2, 4  ;;  %s1299_s21 = smov [#allocation4]   ;;  %s44_s20 = int_to_ptr.hbm [resolvable:$true] %s43_s20 }
   0x4   :  { %s45_s22 = sshll.u32 %s1299_s21, 4  ;;  %s69_s25 = sshll.u32 %s1474_s4, 4  ;;  %s46_s22 = int_to_ptr.vmem [resolvable:$true] %s45_s22  ;;  %s70_s25 = int_to_ptr.hbm [resolvable:$true] %s69_s25 }
   0x5   :  { %s1300_s26 = smov 64   ;;  %s1301_s27 = smov 4  }
   0x6   :  { %51 = dma.hbm_to_vmem [thread:$0]  %s44_s20, 1024, %s46_s22, [#allocation5], %s1300_s26, %s1300_s26, %s1301_s27  }
   0x7   :  { %s1302_s28 = smov [#allocation7]   ;;  %s95_s2 = sshll.u32 %s1476_s6, 4  ;;  %s96_s2 = int_to_ptr.hbm [resolvable:$true] %s95_s2 }
   0x8   :  { %s71_s29 = sshll.u32 %s1302_s28, 4  ;;  %s30_s18 = sshll.u32 %s1471_s1, 4  ;;  %s72_s29 = int_to_ptr.vmem [resolvable:$true] %s71_s29  ;;  %s31_s18 = int_to_ptr.hbm [resolvable:$true] %s30_s18 }
   0x9   :  { %77 = dma.hbm_to_vmem [thread:$0]  %s70_s25, 1024, %s72_s29, [#allocation8], %s1300_s26, %s1300_s26, %s1301_s27  }
   0xa   :  { %s1303_s19 = smov [#allocation10]   ;;  %s1304_s20 = smov [#allocation2]  }
   0xb   :  { %s97_s21 = sshll.u32 %s1303_s19, 4  ;;  %s32_s6 = sshll.u32 %s1304_s20, 4  ;;  %s98_s21 = int_to_ptr.vmem [resolvable:$true] %s97_s21  ;;  %s33_s6 = int_to_ptr.vmem [resolvable:$true] %s32_s6 }
   0xc   :  { %103 = dma.hbm_to_vmem [thread:$0]  %s96_s2, 1024, %s98_s21, [#allocation11], %s1300_s26, %s1300_s26, %s1301_s27  }
   0xd   :  { %s56_s24 = sshll.u32 %s1473_s3, 4  ;;  %s82_s28 = sshll.u32 %s1475_s5, 4  ;;  %s57_s24 = int_to_ptr.hbm [resolvable:$true] %s56_s24  ;;  %s83_s28 = int_to_ptr.hbm [resolvable:$true] %s82_s28 }
   0xe   :  { %38 = dma.hbm_to_vmem [thread:$0]  %s31_s18, 1024, %s33_s6, [#allocation3], %s1300_s26, %s1300_s26, %s1301_s27  }
   0xf   :  { %s1305_s29 = smov [#allocation6]   ;;  %s1306_s16 = smov [#allocation9]  }
  0x10   :  { %s58_s30 = sshll.u32 %s1305_s29, 4  ;;  %s84_s3 = sshll.u32 %s1306_s16, 4  ;;  %s59_s30 = int_to_ptr.vmem [resolvable:$true] %s58_s30  ;;  %s85_s3 = int_to_ptr.vmem [resolvable:$true] %s84_s3 }
  0x11   :  { %64 = dma.hbm_to_vmem [thread:$0]  %s57_s24, 1024, %s59_s30, [#allocation5], %s1300_s26, %s1300_s26, %s1301_s27  }
  0x12   :  { %s108_s17 = sshll.u32 %s1477_s7, 4  ;;  %s1307_s5 = smov [#allocation12]   ;;  %s109_s17 = int_to_ptr.hbm [resolvable:$true] %s108_s17 }
  0x13   :  { %90 = dma.hbm_to_vmem [thread:$0]  %s83_s28, 1024, %s85_s3, [#allocation8], %s1300_s26, %s1300_s26, %s1301_s27  }
  0x14   :  { %s110_s18 = sshll.u32 %s1307_s5, 4  ;;  %s111_s18 = int_to_ptr.vmem [resolvable:$true] %s110_s18 }
  0x15   :  { %116 = dma.hbm_to_vmem [thread:$0]  %s109_s17, 1024, %s111_s18, [#allocation11], %s1300_s26, %s1300_s26, %s1301_s27  }
  0x16   :  { %1291 = dma.done.wait [#allocation3], 1024  }
  0x17   :  { %1292 = vsyncadd [#allocation3], 4294966272 }
  0x18   :  { %1293 = dma.done.wait [#allocation5], 2048  }
  0x19   :  { %1294 = vsyncadd [#allocation5], 4294965248 }
  0x1a   :  { %1295 = dma.done.wait [#allocation8], 2048  }
  0x1b   :  { %1296 = vsyncadd [#allocation8], 4294965248 }
  0x1c   :  { %1297 = dma.done.wait [#allocation11], 2048  }
  0x1d   :  { %1298 = vsyncadd [#allocation11], 4294965248  ;;  %v160_v0 = vlaneseq  ;;  %v1308_v2 = vmov 0.0   ;;  %v1436_v4 = vld [vmem:[%s1470_s0] sm:$0xff]  ;;  %v1041_v18 = vld [vmem:[#allocation2 + $0x38] sm:$0xff] }
  0x1e   :  { %288 = vmatpush.bf16.msra.mxu0 %v1041_v18  ;;  %v1040_v19 = vld [vmem:[#allocation2 + $0x30] sm:$0xff]  ;;  %v1039_v20 = vld [vmem:[#allocation2 + $0x28] sm:$0xff]  ;;  %v1038_v21 = vld [vmem:[#allocation2 + $0x20] sm:$0xff] }
  0x1f   :  { %v161_v1 = vand.u32 127, %v160_v0  ;;  %v1037_v22 = vld [vmem:[#allocation2 + $0x18] sm:$0xff]  ;;  %v1036_v23 = vld [vmem:[#allocation2 + $0x10] sm:$0xff]  ;;  %v1035_v24 = vld [vmem:[#allocation2 + $0x8] sm:$0xff] }
  0x20   :  { %v1034_v25 = vld [vmem:[#allocation2] sm:$0xff]  ;;  %v1049_v29 = vld [vmem:[#allocation4 + $0x38] sm:$0xff]  ;;  %v1048_v30 = vld [vmem:[#allocation4 + $0x30] sm:$0xff] }
  0x21   :  { %vm162_vm0 = vcmp.lt.s32.totalorder %v161_v1, 8  ;;  %vm165_vm1 = vcmp.ge.s32.totalorder %v161_v1, 8  ;;  %vm166_vm2 = vcmp.lt.s32.totalorder %v161_v1, 20  ;;  %371 = vmatpush.bf16.msra.mxu1 %v1049_v29  ;;  %v1047_v35 = vld [vmem:[#allocation4 + $0x28] sm:$0xff]  ;;  %v1046_v38 = vld [vmem:[#allocation4 + $0x20] sm:$0xff]  ;;  %v1045_v43 = vld [vmem:[#allocation4 + $0x18] sm:$0xff] }
  0x22   :  { %v1431_v3 = vsel %vm162_vm0, 1.0, %v1308_v2  ;;  %vm167_vm3 = vmand %vm165_vm1, %vm166_vm2  ;;  %289 = vmatpush.bf16.msra.mxu0 %v1040_v19  ;;  %v1044_v59 = vld [vmem:[#allocation4 + $0x10] sm:$0xff]  ;;  %v1043_v60 = vld [vmem:[#allocation4 + $0x8] sm:$0xff] }
  0x23   :  { %v173_v5 = vmul.f32 %v1431_v3, %v1436_v4  ;;  %v809_v6 = vsel %vm167_vm3, 1.0, %v1308_v2  ;;  %v170_v42 = vsub.f32 1.0, %v1431_v3  ;;  %v1042_v61 = vld [vmem:[#allocation4] sm:$0xff]  ;;  %v1057_v62 = vld [vmem:[#allocation6 + $0x38] sm:$0xff]  ;;  %v1056_v63 = vld [vmem:[#allocation6 + $0x30] sm:$0xff] }
  0x24   :  { %v196_v7 = vmul.f32 %v809_v6, %v1436_v4  ;;  %454 = vmatpush.bf16.msra.mxu2 %v1057_v62  ;;  %v1055_v0 = vld [vmem:[#allocation6 + $0x28] sm:$0xff]  ;;  %v1054_v1 = vld [vmem:[#allocation6 + $0x20] sm:$0xff]  ;;  %v1053_v2 = vld [vmem:[#allocation6 + $0x18] sm:$0xff] }
  0x25   :  { %174 = vadd.xlane.f32.xlu0 %v173_v5  ;;  %372 = vmatpush.bf16.msra.mxu1 %v1048_v30  ;;  %v171_v47 = vsub.f32 %v170_v42, %v809_v6  ;;  %v1070_v29 = vld [vmem:[#allocation9 + $0x20] sm:$0xff]  ;;  %v1069_v30 = vld [vmem:[#allocation9 + $0x18] sm:$0xff]  ;;  %v1079_v42 = vld [vmem:[#allocation10 + $0x28] sm:$0xff] }
  0x26   :  { %290 = vmatpush.bf16.msra.mxu0 %v1039_v20 }
  0x27   :  { %v172_v51 = vmul.f32 %v171_v47, %v1436_v4 }
  0x28   :  { %455 = vmatpush.bf16.msra.mxu2 %v1056_v63 }
  0x29   :  { %373 = vmatpush.bf16.msra.mxu1 %v1047_v35 }
  0x2a   :  { %291 = vmatpush.bf16.msra.mxu0 %v1038_v21 }
  0x2c   :  { %456 = vmatpush.bf16.msra.mxu2 %v1055_v0 }
  0x2d   :  { %197 = vadd.xlane.f32.xlu0 %v196_v7  ;;  %374 = vmatpush.bf16.msra.mxu1 %v1046_v38  ;;  %v1067_v38 = vld [vmem:[#allocation9 + $0x8] sm:$0xff] }
  0x2e   :  { %292 = vmatpush.bf16.msra.mxu0 %v1037_v22 }
  0x30   :  { %457 = vmatpush.bf16.msra.mxu2 %v1054_v1  ;;  %v1084_v1 = vld [vmem:[#allocation12 + $0x10] sm:$0xff] }
  0x31   :  { %375 = vmatpush.bf16.msra.mxu1 %v1045_v43  ;;  %v1078_v43 = vld [vmem:[#allocation10 + $0x20] sm:$0xff] }
  0x32   :  { %293 = vmatpush.bf16.msra.mxu0 %v1036_v23  ;;  %v1060_v23 = vld [vmem:[#allocation7 + $0x10] sm:$0xff] }
  0x34   :  { %458 = vmatpush.bf16.msra.mxu2 %v1053_v2  ;;  %v1083_v2 = vld [vmem:[#allocation12 + $0x8] sm:$0xff] }
  0x35   :  { %376 = vmatpush.bf16.msra.mxu1 %v1044_v59  ;;  %v1104_v59 = vld [vmem:[%s1482_s12] ss:$0 sm:$0xff] }
  0x36   :  { %294 = vmatpush.bf16.msra.mxu0 %v1035_v24  ;;  %v1059_v24 = vld [vmem:[#allocation7 + $0x8] sm:$0xff] }
  0x39   :  { %377 = vmatpush.bf16.msra.mxu1 %v1043_v60 }
  0x3a   :  { %295 = vmatpush.bf16.msra.mxu0 %v1034_v25  ;;  %v1058_v25 = vld [vmem:[#allocation7] sm:$0xff] }
  0x3d   :  { %378 = vmatpush.bf16.msra.mxu1 %v1042_v61 }
  0x98   :  { %v175_v8 = vpop.xlane.xlu0 %174 }
  0x99   :  { %v176_v9 = vmul.f32 0.125, %v175_v8 }
  0x9b   :  { %v177_v10 = vsub.f32 %v1436_v4, %v176_v9  ;;  %v1052_v9 = vld [vmem:[#allocation6 + $0x10] sm:$0xff] }
  0x9c   :  { %459 = vmatpush.bf16.msra.mxu2 %v1052_v9 }
  0x9d   :  { %v178_v11 = vmul.f32 %v1431_v3, %v177_v10  ;;  %v1100_v3 = vld [vmem:[%s1478_s8] ss:$0 sm:$0xff]  ;;  %v1051_v10 = vld [vmem:[#allocation6 + $0x8] sm:$0xff] }
  0x9f   :  { %v179_v12 = vmul.f32 %v178_v11, %v178_v11 }
  0xa0   :  { %v198_v13 = vpop.xlane.xlu0 %197  ;;  %460 = vmatpush.bf16.msra.mxu2 %v1051_v10  ;;  %v1106_v10 = vld [vmem:[%s1484_s14] ss:$0 sm:$0xff] }
  0xa1   :  { %v199_v14 = vmul.f32 0.083333336, %v198_v13  ;;  %180 = vadd.xlane.f32.xlu1 %v179_v12  ;;  %v1065_v12 = vld [vmem:[#allocation7 + $0x38] sm:$0xff]  ;;  %v1064_v13 = vld [vmem:[#allocation7 + $0x30] sm:$0xff] }
  0xa2   :  { %537 = vmatpush.bf16.msra.mxu3 %v1065_v12 }
  0xa3   :  { %v200_v15 = vsub.f32 %v1436_v4, %v199_v14  ;;  %v1063_v14 = vld [vmem:[#allocation7 + $0x28] sm:$0xff] }
  0xa5   :  { %v201_v16 = vmul.f32 %v809_v6, %v200_v15  ;;  %v1062_v15 = vld [vmem:[#allocation7 + $0x20] sm:$0xff] }
  0xa6   :  { %538 = vmatpush.bf16.msra.mxu3 %v1064_v13 }
  0xa7   :  { %v202_v17 = vmul.f32 %v201_v16, %v201_v16 }
  0xa9   :  { %203 = vadd.xlane.f32.xlu1 %v202_v17  ;;  %v1101_v17 = vld [vmem:[%s1479_s9] ss:$0 sm:$0xff] }
  0xaa   :  { %539 = vmatpush.bf16.msra.mxu3 %v1063_v14 }
  0xae   :  { %540 = vmatpush.bf16.msra.mxu3 %v1062_v15 }
 0x114   :  { %v181_v26 = vpop.xlane.xlu1 %180 }
 0x115   :  { %v182_v27 = vmul.f32 0.125, %v181_v26  ;;  %v1073_v26 = vld [vmem:[#allocation9 + $0x38] sm:$0xff] }
 0x116   :  { %620 = vmatpush.bf16.msrb.mxu0 %v1073_v26 }
 0x117   :  { %v183_v28 = vadd.f32 1e-05, %v182_v27  ;;  %v1072_v27 = vld [vmem:[#allocation9 + $0x30] sm:$0xff] }
 0x119   :  { %1107 = vrsqrt.f32 %v183_v28  ;;  %vm190_vm5 = vweird.f32 %v183_v28 }
 0x11a   :  { %621 = vmatpush.bf16.msrb.mxu0 %v1072_v27 }
 0x11c   :  { %v204_v31 = vpop.xlane.xlu1 %203 }
 0x11d   :  { %v205_v32 = vmul.f32 0.083333336, %v204_v31  ;;  %v1102_v31 = vld [vmem:[%s1480_s10] ss:$0 sm:$0xff] }
 0x11f   :  { %v1108_v33 = vpop.eup %1107  ;;  %v206_v34 = vadd.f32 1e-05, %v205_v32 }
 0x120   :  { %v185_v36 = vmul.f32 %v1108_v33, %v183_v28  ;;  %vm191_vm4 = vweird.f32 %v1108_v33  ;;  %v1071_v28 = vld [vmem:[#allocation9 + $0x28] sm:$0xff] }
 0x121   :  { %1109 = vrsqrt.f32 %v206_v34  ;;  %vm192_vm6 = vmor %vm190_vm5, %vm191_vm4  ;;  %vm213_vm8 = vweird.f32 %v206_v34  ;;  %622 = vmatpush.bf16.msrb.mxu0 %v1071_v28 }
 0x122   :  { %v186_v37 = vmul.f32 %v1108_v33, %v185_v36 }
 0x124   :  { %v187_v39 = vmul.f32 0.5, %v186_v37  ;;  %v1068_v37 = vld [vmem:[#allocation9 + $0x10] sm:$0xff] }
 0x125   :  { %623 = vmatpush.bf16.msrb.mxu0 %v1070_v29 }
 0x126   :  { %v188_v40 = vsub.f32 1.5, %v187_v39  ;;  %v1066_v39 = vld [vmem:[#allocation9] sm:$0xff] }
 0x127   :  { %v1110_v41 = vpop.eup %1109 }
 0x128   :  { %v189_v44 = vmul.f32 %v1108_v33, %v188_v40  ;;  %v208_v45 = vmul.f32 %v1110_v41, %v206_v34  ;;  %vm214_vm7 = vweird.f32 %v1110_v41  ;;  %v1081_v40 = vld [vmem:[#allocation10 + $0x38] sm:$0xff] }
 0x129   :  { %vm215_vm9 = vmor %vm213_vm8, %vm214_vm7  ;;  %624 = vmatpush.bf16.msrb.mxu0 %v1069_v30  ;;  %703 = vmatpush.bf16.msrb.mxu1 %v1081_v40 }
 0x12a   :  { %v209_v46 = vmul.f32 %v1110_v41, %v208_v45  ;;  %v193_v49 = vsel %vm192_vm6, %v1108_v33, %v189_v44  ;;  %v1077_v44 = vld [vmem:[#allocation10 + $0x18] sm:$0xff]  ;;  %v1103_v45 = vld [vmem:[%s1481_s11] ss:$0 sm:$0xff] }
 0x12b   :  { %v194_v52 = vmul.f32 %v193_v49, %v178_v11  ;;  %v1050_v11 = vld [vmem:[#allocation6] sm:$0xff] }
 0x12c   :  { %v210_v48 = vmul.f32 0.5, %v209_v46  ;;  %461 = vmatpush.bf16.msra.mxu2 %v1050_v11 }
 0x12d   :  { %v195_v55 = vadd.f32 %v194_v52, %v172_v51  ;;  %625 = vmatpush.bf16.msrb.mxu0 %v1068_v37  ;;  %v1076_v51 = vld [vmem:[#allocation10 + $0x10] sm:$0xff]  ;;  %v1075_v52 = vld [vmem:[#allocation10 + $0x8] sm:$0xff] }
 0x12e   :  { %v211_v50 = vsub.f32 1.5, %v210_v48 }
 0x130   :  { %v212_v53 = vmul.f32 %v1110_v41, %v211_v50 }
 0x131   :  { %626 = vmatpush.bf16.msrb.mxu0 %v1067_v38 }
 0x132   :  { %v216_v54 = vsel %vm215_vm9, %v1110_v41, %v212_v53  ;;  %v1080_v41 = vld [vmem:[#allocation10 + $0x30] sm:$0xff]  ;;  %v1074_v53 = vld [vmem:[#allocation10] sm:$0xff] }
 0x133   :  { %v217_v56 = vmul.f32 %v216_v54, %v201_v16  ;;  %v1061_v16 = vld [vmem:[#allocation7 + $0x18] sm:$0xff]  ;;  %704 = vmatpush.bf16.msrb.mxu1 %v1080_v41 }
 0x134   :  { %541 = vmatpush.bf16.msra.mxu3 %v1061_v16  ;;  %v1089_v54 = vld [vmem:[#allocation12 + $0x38] sm:$0xff] }
 0x135   :  { %v218_v57 = vadd.f32 %v217_v56, %v195_v55  ;;  %627 = vmatpush.bf16.msrb.mxu0 %v1066_v39  ;;  %786 = vmatpush.bf16.msrb.mxu2 %v1089_v54  ;;  %v1088_v55 = vld [vmem:[#allocation12 + $0x30] sm:$0xff]  ;;  %v1087_v56 = vld [vmem:[#allocation12 + $0x28] sm:$0xff] }
 0x137   :  { %v219_v58 = vpack.c.bf16 %v218_v57, %v218_v57  ;;  %705 = vmatpush.bf16.msrb.mxu1 %v1079_v42  ;;  %v1086_v57 = vld [vmem:[#allocation12 + $0x20] sm:$0xff] }
 0x138   :  { %542 = vmatpush.bf16.msra.mxu3 %v1060_v23 }
 0x139   :  { %296 = vmatmul.bf16.vlgmr.msra.gmra.mxu0 %v219_v58  ;;  %787 = vmatpush.bf16.msrb.mxu2 %v1088_v55  ;;  %v1085_v58 = vld [vmem:[#allocation12 + $0x18] sm:$0xff] }
 0x13b   :  { %706 = vmatpush.bf16.msrb.mxu1 %v1078_v43 }
 0x13c   :  { %543 = vmatpush.bf16.msra.mxu3 %v1059_v24 }
 0x13d   :  { %788 = vmatpush.bf16.msrb.mxu2 %v1087_v56 }
 0x13f   :  { %707 = vmatpush.bf16.msrb.mxu1 %v1077_v44 }
 0x140   :  { %544 = vmatpush.bf16.msra.mxu3 %v1058_v25 }
 0x141   :  { %789 = vmatpush.bf16.msrb.mxu2 %v1086_v57 }
 0x143   :  { %708 = vmatpush.bf16.msrb.mxu1 %v1076_v51 }
 0x145   :  { %790 = vmatpush.bf16.msrb.mxu2 %v1085_v58 }
 0x147   :  { %709 = vmatpush.bf16.msrb.mxu1 %v1075_v52 }
 0x149   :  { %791 = vmatpush.bf16.msrb.mxu2 %v1084_v1 }
 0x14b   :  { %710 = vmatpush.bf16.msrb.mxu1 %v1074_v53 }
 0x14d   :  { %792 = vmatpush.bf16.msrb.mxu2 %v1083_v2 }
 0x1b6   :  { %v297_v4 = vpop.f32.mrf.mxu0 }
 0x1b7   :  { %v298_v5 = vadd.f32 %v1100_v3, %v297_v4  ;;  %v1082_v3 = vld [vmem:[#allocation12] sm:$0xff] }
 0x1b8   :  { %793 = vmatpush.bf16.msrb.mxu2 %v1082_v3  ;;  %v1105_v4 = vld [vmem:[%s1483_s13] ss:$0 sm:$0xff] }
 0x1b9   :  { %1111 = vtanh.f32 %v298_v5 }
 0x1be   :  { %v299_v6 = vpop.f32.mrf.mxu0 }
 0x1bf   :  { %v1112_v7 = vpop.eup %1111 }
 0x1c0   :  { %v302_v8 = vpack.c.bf16 %v1112_v7, %v1112_v7 }
 0x1c2   :  { %379 = vmatmul.bf16.vlgmr.msra.gmra.mxu1 %v302_v8 }
 0x23f   :  { %v380_v18 = vpop.f32.mrf.mxu1 }
 0x240   :  { %v381_v19 = vadd.f32 %v1101_v17, %v380_v18 }
 0x242   :  { %1113 = vtanh.f32 %v381_v19 }
 0x247   :  { %v382_v20 = vpop.f32.mrf.mxu1 }
 0x248   :  { %v1114_v21 = vpop.eup %1113 }
 0x249   :  { %v385_v22 = vpack.c.bf16 %v1114_v21, %v1114_v21 }
 0x24b   :  { %462 = vmatmul.bf16.vlgmr.msra.gmra.mxu2 %v385_v22 }
 0x2ce   :  { %v463_v32 = vpop.f32.mrf.mxu2 }
 0x2cf   :  { %v464_v33 = vadd.f32 %v1102_v31, %v463_v32 }
 0x2d1   :  { %1115 = vtanh.f32 %v464_v33 }
 0x2d6   :  { %v465_v34 = vpop.f32.mrf.mxu2 }
 0x2d7   :  { %v1116_v35 = vpop.eup %1115 }
 0x2d8   :  { %v468_v36 = vpack.c.bf16 %v1116_v35, %v1116_v35 }
 0x2da   :  { %545 = vmatmul.bf16.vlgmr.msra.gmra.mxu3 %v468_v36 }
 0x35d   :  { %v546_v46 = vpop.f32.mrf.mxu3 }
 0x35e   :  { %v547_v47 = vadd.f32 %v1103_v45, %v546_v46 }
 0x360   :  { %1117 = vtanh.f32 %v547_v47 }
 0x365   :  { %v548_v48 = vpop.f32.mrf.mxu3 }
 0x366   :  { %v1118_v49 = vpop.eup %1117 }
 0x367   :  { %v551_v50 = vpack.c.bf16 %v1118_v49, %v1118_v49 }
 0x369   :  { %628 = vmatmul.bf16.vlgmr.msrb.gmra.mxu0 %v551_v50 }
 0x3e6   :  { %v629_v60 = vpop.f32.mrf.mxu0 }
 0x3e7   :  { %v630_v61 = vadd.f32 %v1104_v59, %v629_v60 }
 0x3e9   :  { %1119 = vtanh.f32 %v630_v61 }
 0x3ee   :  { %v631_v62 = vpop.f32.mrf.mxu0 }
 0x3ef   :  { %v1120_v63 = vpop.eup %1119 }
 0x3f0   :  { %v634_v0 = vpack.c.bf16 %v1120_v63, %v1120_v63 }
 0x3f2   :  { %711 = vmatmul.bf16.vlgmr.msrb.gmra.mxu1 %v634_v0 }
 0x46f   :  { %v712_v5 = vpop.f32.mrf.mxu1 }
 0x470   :  { %v713_v6 = vadd.f32 %v1105_v4, %v712_v5 }
 0x472   :  { %1121 = vtanh.f32 %v713_v6 }
 0x477   :  { %v714_v7 = vpop.f32.mrf.mxu1 }
 0x478   :  { %v1122_v8 = vpop.eup %1121 }
 0x479   :  { %v717_v9 = vpack.c.bf16 %v1122_v8, %v1122_v8 }
 0x47b   :  { %794 = vmatmul.bf16.vlgmr.msrb.gmra.mxu2 %v717_v9 }
 0x4fe   :  { %v795_v11 = vpop.f32.mrf.mxu2 }
 0x4ff   :  { %v796_v12 = vadd.f32 %v1106_v10, %v795_v11 }
 0x501   :  { %799 = vst [vmem:[%s1485_s15] sm:$0xff] %v796_v12 }
 0x506   :  { %v797_v13 = vpop.f32.mrf.mxu2 }
 0x507   :  { %804 = vsyncpa [#allocation3], 1 }
 0x508   :  { %805 = vsyncpa [#allocation5], 1 }
 0x509   :  { %806 = vsyncpa [#allocation8], 1 }
 0x50a   :  { %807 = vsyncpa [#allocation11], 1 }

</bundles_post_ra>
